<compile_context>
chip_gen: v7x
topology: tpu7x:2x2x1
jax: 0.10.0
libtpu: 0.0.40
codegen_flags: <defaults>
</compile_context>

<pallas_src>
import functools
import math

import jax
import jax.numpy as jnp
from jax import lax
from jax.experimental import pallas as pl
from jax.experimental.pallas import tpu as pltpu

NEG_LARGE = -1e30   # stand-in for masked_fill(attn_mask, -inf); exp() -> 0 after max-sub


# --------------------------------------------------------------------------------------
# helpers
# --------------------------------------------------------------------------------------
def _vmem_limit_bytes():
    """~75% of physical VMEM: ~96 MiB on v5e/v6e (128 MiB), ~48 MiB on v7x (64 MiB)."""
    cap = 64 * 1024 * 1024                       # conservative default (v7x physical)
    try:
        info = pltpu.get_tpu_info()
        cap = int(getattr(info, "vmem_capacity_bytes", cap)) or cap
    except Exception:
        pass
    return min((cap * 3) // 4, 100 * 1024 * 1024)


def _pick_tile(n, candidates):
    """Largest candidate tile that divides n, else the full extent (toy shapes)."""
    for c in candidates:
        if n % c == 0:
            return c
    return n


def _const_spec(arr):
    """Full-array BlockSpec with a constant index map, single-buffered (weights/params
    are DMA'd once; avoids holding a second resident copy — critical on v7x VMEM)."""
    n = arr.ndim
    idx = lambda *_: (0,) * n
    try:
        return pl.BlockSpec(arr.shape, idx, pipeline_mode=pl.Buffered(1))
    except Exception:   # older jax without pipeline_mode: fall back to default buffering
        return pl.BlockSpec(arr.shape, idx)


# --------------------------------------------------------------------------------------
# Pass 1: fused QKV projection (+ attn_scale folded into q, heads pre-split)
# --------------------------------------------------------------------------------------
def _qkv_proj_kernel(scale_ref, x_ref, w_ref, b_ref, q_ref, k_ref, v_ref):
    E = x_ref.shape[-1]
    H = q_ref.shape[1]
    hd = q_ref.shape[3]

    x = x_ref[0]                                                    # (tt, E) bf16
    # single fused matmul: (tt, E) x (E, 3E), f32 accumulation, one bias add
    qkv = jnp.dot(x, w_ref[...], preferred_element_type=jnp.float32) + b_ref[...]

    def heads(t):                                                   # (tt, E) f32 -> (H, tt, hd) bf16
        t = t.astype(jnp.bfloat16)
        return jnp.transpose(t.reshape(t.shape[0], H, hd), (1, 0, 2))

    # attn_scale folded into q in f32 before the bf16 cast (saves an H*T*T VPU pass later)
    q_ref[0] = heads(qkv[:, :E] * scale_ref[0])
    k_ref[0] = heads(qkv[:, E:2 * E])
    v_ref[0] = heads(qkv[:, 2 * E:])


# --------------------------------------------------------------------------------------
# Pass 2: flash-style thresholded attention with fused output projection
# --------------------------------------------------------------------------------------
def _flash_attn_kernel(thr_ref, q_ref, k_ref, v_ref, wo_ref, bo_ref, out_ref,
                       m_sc, l_sc, acc_sc, *, causal):
    _, H, tq, hd = q_ref.shape
    tkv = k_ref.shape[2]

    qi = pl.program_id(1)
    ki = pl.program_id(2)

    @pl.when(ki == 0)
    def _init():
        m_sc[...] = jnp.full_like(m_sc, -jnp.inf)
        l_sc[...] = jnp.zeros_like(l_sc)
        acc_sc[...] = jnp.zeros_like(acc_sc)

    def _tile():
        q = q_ref[0]             # (H, tq,  hd) bf16  (attn_scale already folded in)
        k = k_ref[0]             # (H, tkv, hd) bf16
        v = v_ref[0]             # (H, tkv, hd) bf16

        s = jnp.einsum('hqd,hkd->hqk', q, k,
                       preferred_element_type=jnp.float32)          # (H, tq, tkv) f32

        # Threshold everywhere, then one additive causal bias.  Masked positions end up
        # ~-1e30 regardless of the threshold branch, so post-softmax this is identical
        # to masked_fill(-inf) followed by thresholding only the finite scores.
        s = jnp.where(s < thr_ref[...], -10000.0, s)
        if causal:
            row = qi * tq + lax.broadcasted_iota(jnp.int32, (tq, tkv), 0)
            col = ki * tkv + lax.broadcasted_iota(jnp.int32, (tq, tkv), 1)
            s = s + jnp.where(col > row, jnp.float32(NEG_LARGE), jnp.float32(0.0))[None]

        # online softmax update
        m_prev = m_sc[...]
        m_new = jnp.maximum(m_prev, jnp.max(s, axis=-1, keepdims=True))
        a = jnp.exp(m_prev - m_new)
        p = jnp.exp(s - m_new)
        l_sc[...] = a * l_sc[...] + jnp.sum(p, axis=-1, keepdims=True)
        acc_sc[...] = a * acc_sc[...] + jnp.einsum(
            'hqk,hkd->hqd', p.astype(jnp.bfloat16), v,
            preferred_element_type=jnp.float32)
        m_sc[...] = m_new

    if causal:
        # Skip KV tiles lying entirely above the causal diagonal (pure upper triangle).
        @pl.when(ki * tkv <= qi * tq + (tq - 1))
        def _():
            _tile()
    else:
        _tile()

    @pl.when(ki == pl.num_programs(2) - 1)
    def _finalize():
        attn = (acc_sc[...] * pl.reciprocal(l_sc[...], approx=True)
                ).astype(jnp.bfloat16)                               # (H, tq, hd)
        # out = einsum('hqd,hde->qe', attn, Wo) realized as per-head 2-D MXU matmuls
        # accumulated in f32 -> no head-merge transpose, no (H,tq,E) intermediate.
        out = jnp.dot(attn[0], wo_ref[0], preferred_element_type=jnp.float32)
        for h in range(1, H):
            out = out + jnp.dot(attn[h], wo_ref[h], preferred_element_type=jnp.float32)
        out_ref[0] = (out + bo_ref[...]).astype(out_ref.dtype)


# --------------------------------------------------------------------------------------
# wrapper
# --------------------------------------------------------------------------------------
@functools.partial(jax.jit, static_argnames=("causal",))
def thresholded_attention(x, params, *, causal=True):
    """Eval-mode ThresholdedAttention.forward. causal=True supplies a causal attn_mask."""
    B, T, E = x.shape
    H = params["attn_thresh"].shape[0]
    hd = E // H
    bf = jnp.bfloat16

    vmem_limit = _vmem_limit_bytes()

    # ---- one-time weight prep (wrapper-side, outside the kernels) --------------------
    w_qkv = jnp.concatenate([params["wq"], params["wk"], params["wv"]], axis=1).astype(bf)
    b_qkv = jnp.concatenate([params["bq"], params["bk"], params["bv"]], axis=1)   # f32
    wo_hde = params["wo"].reshape(H, hd, E).astype(bf)                            # (H,hd,E)
    bo = params["bo"]                                                             # (1,E) f32
    xb = x.astype(bf)                                                             # bf16 input

    # ---- tile sizes (multiples of 256/128 where possible; full extent for toy) -------
    tt = _pick_tile(T, (256, 128))
    tq = _pick_tile(T, (256, 128))
    tkv = _pick_tile(T, (512, 256, 128))

    # ---- pass 1: fused QKV projection -------------------------------------------------
    qkv_fn = pl.pallas_call(
        _qkv_proj_kernel,
        out_shape=(jax.ShapeDtypeStruct((B, H, T, hd), bf),) * 3,
        grid=(B, T // tt),
        in_specs=[
            pl.BlockSpec(memory_space=pltpu.MemorySpace.SMEM),     # attn_scale (1,)
            pl.BlockSpec((1, tt, E), lambda b, t: (b, t, 0)),      # x
            _const_spec(w_qkv),                                    # (E, 3E)  Buffered(1)
            _const_spec(b_qkv),                                    # (1, 3E)  Buffered(1)
        ],
        out_specs=(pl.BlockSpec((1, H, tt, hd), lambda b, t: (b, 0, t, 0)),) * 3,
        compiler_params=pltpu.CompilerParams(
            dimension_semantics=("parallel", "parallel"),
            vmem_limit_bytes=vmem_limit),
    )
    q, k, v = qkv_fn(params["attn_scale"], xb, w_qkv, b_qkv)

    # ---- pass 2: flash attention + threshold + fused out-proj -------------------------
    attn_fn = pl.pallas_call(
        functools.partial(_flash_attn_kernel, causal=causal),
        out_shape=jax.ShapeDtypeStruct((B, T, E), x.dtype),
        grid=(B, T // tq, T // tkv),
        in_specs=[
            _const_spec(params["attn_thresh"]),                               # (H,1,1)
            pl.BlockSpec((1, H, tq, hd), lambda b, qi, ki: (b, 0, qi, 0)),    # q
            pl.BlockSpec((1, H, tkv, hd), lambda b, qi, ki: (b, 0, ki, 0)),   # k
            pl.BlockSpec((1, H, tkv, hd), lambda b, qi, ki: (b, 0, ki, 0)),   # v
            _const_spec(wo_hde),                                              # Buffered(1)
            _const_spec(bo),                                                  # Buffered(1)
        ],
        out_specs=pl.BlockSpec((1, tq, E), lambda b, qi, ki: (b, qi, 0)),
        scratch_shapes=[
            pltpu.VMEM((H, tq, 1), jnp.float32),    # running max
            pltpu.VMEM((H, tq, 1), jnp.float32),    # running denom
            pltpu.VMEM((H, tq, hd), jnp.float32),   # running numerator
        ],
        compiler_params=pltpu.CompilerParams(
            dimension_semantics=("parallel", "parallel", "arbitrary"),
            vmem_limit_bytes=vmem_limit),
    )
    return attn_fn(params["attn_thresh"], q, k, v, wo_hde, bo)


# --------------------------------------------------------------------------------------
# pure-JAX reference with matched bf16 matmul rounding (for verification)
# --------------------------------------------------------------------------------------
def thresholded_attention_ref(x, params, *, causal=True):
    B, T, E = x.shape
    H = params["attn_thresh"].shape[0]
    hd = E // H
    bf = jnp.bfloat16
    xb = x.astype(bf)
    scale = params["attn_scale"][0]

    def proj(w, b):
        return jnp.dot(xb, w.astype(bf), preferred_element_type=jnp.float32) + b

    q = proj(params["wq"], params["bq"]) * scale     # scale folded into q (matches kernel)
    k = proj(params["wk"], params["bk"])
    v = proj(params["wv"], params["bv"])

    def split(t):
        return jnp.transpose(t.reshape(B, T, H, hd), (0, 2, 1, 3)).astype(bf)

    q4, k4, v4 = split(q), split(k), split(v)
    s = jnp.einsum('bhqd,bhkd->bhqk', q4, k4, preferred_element_type=jnp.float32)
    if causal:
        cm = jnp.triu(jnp.ones((T, T), bool), k=1)[None, None]
        s = jnp.where(cm, -jnp.inf, s)
    thr = params["attn_thresh"].reshape(1, H, 1, 1)
    below = jnp.logical_and(jnp.logical_not(jnp.isinf(s)), s < thr)
    s = jnp.where(below, -10000.0, s)
    pw = jax.nn.softmax(s, axis=-1)
    ctx = jnp.einsum('bhqk,bhkd->bhqd', pw.astype(bf), v4,
                     preferred_element_type=jnp.float32)
    attn = jnp.transpose(ctx, (0, 2, 1, 3)).reshape(B, T, E)
    return jnp.dot(attn.astype(bf), params["wo"].astype(bf),
                   preferred_element_type=jnp.float32) + params["bo"]


# --------------------------------------------------------------------------------------
# params
# --------------------------------------------------------------------------------------
def init_params(key, embed_dim, n_heads):
    head_dim = embed_dim // n_heads
    keys = jax.random.split(key, 4)

    def linear(k, fan_in, fan_out):
        kw, kb = jax.random.split(k)
        bound = 1.0 / math.sqrt(fan_in)
        w = jax.random.uniform(kw, (fan_in, fan_out), jnp.float32, -bound, bound)
        b = jax.random.uniform(kb, (1, fan_out), jnp.float32, -bound, bound)
        return w, b

    wq, bq = linear(keys[0], embed_dim, embed_dim)
    wk, bk = linear(keys[1], embed_dim, embed_dim)
    wv, bv = linear(keys[2], embed_dim, embed_dim)
    wo, bo = linear(keys[3], embed_dim, embed_dim)

    # attn_scale init = 1/sqrt(head_dim); score_threshold = 0.5; running_var = 1 (eval).
    attn_scale = jnp.array([1.0 / math.sqrt(head_dim)], jnp.float32)
    score_running_var = jnp.ones((n_heads,), jnp.float32)
    sig_half = 1.0 / (1.0 + math.exp(-0.5))
    attn_thresh = (sig_half * jnp.sqrt(jnp.maximum(score_running_var, 1e-6))
                   ).reshape(n_heads, 1, 1)

    return dict(attn_scale=attn_scale, attn_thresh=attn_thresh,
                wq=wq, bq=bq, wk=wk, bk=bk, wv=wv, bv=bv, wo=wo, bo=bo)


if __name__ == "__main__":
    key = jax.random.PRNGKey(0)
    pkey, xkey, xkey2 = jax.random.split(key, 3)

    # ---- toy shapes: single tile per axis ---------------------------------------------
    B, T, E, H = 2, 8, 32, 4
    params = init_params(pkey, E, H)
    x = jax.random.normal(xkey, (B, T, E), jnp.float32)

    y = jax.block_until_ready(thresholded_attention(x, params, causal=True))
    assert y.shape == (B, T, E), y.shape
    assert bool(jnp.all(jnp.isfinite(y)))
    y_ref = thresholded_attention_ref(x, params, causal=True)
    err = float(jnp.max(jnp.abs(y - y_ref)))
    assert err < 5e-2, f"causal max abs err {err}"

    y2 = jax.block_until_ready(thresholded_attention(x, params, causal=False))
    y2_ref = thresholded_attention_ref(x, params, causal=False)
    err2 = float(jnp.max(jnp.abs(y2 - y2_ref)))
    assert err2 < 5e-2, f"no-mask max abs err {err2}"

    # ---- longer sequence: exercises multi-tile flash path (online softmax across KV
    # tiles, causal tile skip), still tiny in bytes ---------------------------------
    B2, T2 = 1, 1024
    x_big = jax.random.normal(xkey2, (B2, T2, E), jnp.float32)
    y3 = jax.block_until_ready(thresholded_attention(x_big, params, causal=True))
    assert y3.shape == (B2, T2, E)
    assert bool(jnp.all(jnp.isfinite(y3)))
    y3_ref = thresholded_attention_ref(x_big, params, causal=True)
    err3 = float(jnp.max(jnp.abs(y3 - y3_ref)))
    assert err3 < 5e-2, f"tiled causal max abs err {err3}"

    print("KERNEL_OK")
</pallas_src>

<mosaic_0001>
module attributes {stable_mosaic.version = 11 : i64} {
  func.func @_qkv_proj_kernel(%arg0: i32, %arg1: i32, %arg2: memref<1xf32, #tpu.memory_space<smem>>, %arg3: memref<1x8x32xbf16, #tpu.memory_space<vmem>>, %arg4: memref<32x96xbf16, #tpu.memory_space<vmem>>, %arg5: memref<1x96xf32, #tpu.memory_space<vmem>>, %arg6: memref<1x4x8x8xbf16, #tpu.memory_space<vmem>>, %arg7: memref<1x4x8x8xbf16, #tpu.memory_space<vmem>>, %arg8: memref<1x4x8x8xbf16, #tpu.memory_space<vmem>>) attributes {dimension_semantics = [#tpu.dimension_semantics<parallel>, #tpu.dimension_semantics<parallel>], iteration_bounds = array<i64: 2, 1>, scalar_prefetch = 0 : i64, scratch_operands = 0 : i64, tpu.core_type = #tpu.core_type<tc>, window_params = [{transform_indices = @transform_0, window_bounds = array<i64: 1>}, {transform_indices = @transform_1, window_bounds = array<i64: 1, 8, 32>}, {pipeline_mode = #tpu.pipeline_mode<synchronous>, transform_indices = @transform_2, window_bounds = array<i64: 32, 96>}, {pipeline_mode = #tpu.pipeline_mode<synchronous>, transform_indices = @transform_3, window_bounds = array<i64: 1, 96>}, {transform_indices = @transform_4, window_bounds = array<i64: 1, 4, 8, 8>}, {transform_indices = @transform_5, window_bounds = array<i64: 1, 4, 8, 8>}, {transform_indices = @transform_6, window_bounds = array<i64: 1, 4, 8, 8>}]} {
    %c0 = arith.constant 0 : index
    %c0_0 = arith.constant 0 : index
    %c0_1 = arith.constant 0 : index
    %0 = vector.load %arg3[%c0, %c0_0, %c0_1] : memref<1x8x32xbf16, #tpu.memory_space<vmem>>, vector<1x8x32xbf16>
    %1 = vector.shape_cast %0 : vector<1x8x32xbf16> to vector<8x32xbf16>
    %c0_2 = arith.constant 0 : index
    %c0_3 = arith.constant 0 : index
    %2 = vector.load %arg4[%c0_2, %c0_3] : memref<32x96xbf16, #tpu.memory_space<vmem>>, vector<32x96xbf16>
    %cst = arith.constant dense<0.000000e+00> : vector<8x96xf32>
    %3 = tpu.matmul %1, %2, %cst {dimension_numbers = #tpu.dot_dimension_numbers<[1], [0], [0], [1], [0, 0, 1, 1], [], []>} : vector<8x32xbf16>, vector<32x96xbf16>, vector<8x96xf32> -> vector<8x96xf32>
    %c0_4 = arith.constant 0 : index
    %c0_5 = arith.constant 0 : index
    %4 = vector.load %arg5[%c0_4, %c0_5] : memref<1x96xf32, #tpu.memory_space<vmem>>, vector<1x96xf32>
    %5 = vector.broadcast %4 : vector<1x96xf32> to vector<8x96xf32>
    %6 = arith.addf %3, %5 : vector<8x96xf32>
    %7 = vector.extract_strided_slice %6 {offsets = [0, 0], sizes = [8, 32], strides = [1, 1]} : vector<8x96xf32> to vector<8x32xf32>
    %c0_6 = arith.constant 0 : index
    %8 = memref.load %arg2[%c0_6] : memref<1xf32, #tpu.memory_space<smem>>
    %9 = vector.broadcast %8 : f32 to vector<8x32xf32>
    %10 = arith.mulf %7, %9 : vector<8x32xf32>
    %11 = arith.truncf %10 : vector<8x32xf32> to vector<8x32xbf16>
    %12 = vector.shape_cast %11 : vector<8x32xbf16> to vector<8x4x8xbf16>
    %13 = tpu.transpose %12, [1, 0, 2] : vector<8x4x8xbf16> -> vector<4x8x8xbf16>
    %c0_7 = arith.constant 0 : index
    %c0_8 = arith.constant 0 : index
    %c0_9 = arith.constant 0 : index
    %c0_10 = arith.constant 0 : index
    %14 = vector.load %arg6[%c0_7, %c0_8, %c0_9, %c0_10] : memref<1x4x8x8xbf16, #tpu.memory_space<vmem>>, vector<1x4x8x8xbf16>
    %15 = vector.shape_cast %14 : vector<1x4x8x8xbf16> to vector<4x8x8xbf16>
    %16 = vector.shape_cast %13 : vector<4x8x8xbf16> to vector<1x4x8x8xbf16>
    tpu.vector_store %arg6[%c0_7, %c0_8, %c0_9, %c0_10], %16 {strides = array<i32>} : memref<1x4x8x8xbf16, #tpu.memory_space<vmem>>, vector<1x4x8x8xbf16>,
    %17 = vector.extract_strided_slice %6 {offsets = [0, 32], sizes = [8, 32], strides = [1, 1]} : vector<8x96xf32> to vector<8x32xf32>
    %18 = arith.truncf %17 : vector<8x32xf32> to vector<8x32xbf16>
    %19 = vector.shape_cast %18 : vector<8x32xbf16> to vector<8x4x8xbf16>
    %20 = tpu.transpose %19, [1, 0, 2] : vector<8x4x8xbf16> -> vector<4x8x8xbf16>
    %c0_11 = arith.constant 0 : index
    %c0_12 = arith.constant 0 : index
    %c0_13 = arith.constant 0 : index
    %c0_14 = arith.constant 0 : index
    %21 = vector.load %arg7[%c0_11, %c0_12, %c0_13, %c0_14] : memref<1x4x8x8xbf16, #tpu.memory_space<vmem>>, vector<1x4x8x8xbf16>
    %22 = vector.shape_cast %21 : vector<1x4x8x8xbf16> to vector<4x8x8xbf16>
    %23 = vector.shape_cast %20 : vector<4x8x8xbf16> to vector<1x4x8x8xbf16>
    tpu.vector_store %arg7[%c0_11, %c0_12, %c0_13, %c0_14], %23 {strides = array<i32>} : memref<1x4x8x8xbf16, #tpu.memory_space<vmem>>, vector<1x4x8x8xbf16>,
    %24 = vector.extract_strided_slice %6 {offsets = [0, 64], sizes = [8, 32], strides = [1, 1]} : vector<8x96xf32> to vector<8x32xf32>
    %25 = arith.truncf %24 : vector<8x32xf32> to vector<8x32xbf16>
    %26 = vector.shape_cast %25 : vector<8x32xbf16> to vector<8x4x8xbf16>
    %27 = tpu.transpose %26, [1, 0, 2] : vector<8x4x8xbf16> -> vector<4x8x8xbf16>
    %c0_15 = arith.constant 0 : index
    %c0_16 = arith.constant 0 : index
    %c0_17 = arith.constant 0 : index
    %c0_18 = arith.constant 0 : index
    %28 = vector.load %arg8[%c0_15, %c0_16, %c0_17, %c0_18] : memref<1x4x8x8xbf16, #tpu.memory_space<vmem>>, vector<1x4x8x8xbf16>
    %29 = vector.shape_cast %28 : vector<1x4x8x8xbf16> to vector<4x8x8xbf16>
    %30 = vector.shape_cast %27 : vector<4x8x8xbf16> to vector<1x4x8x8xbf16>
    tpu.vector_store %arg8[%c0_15, %c0_16, %c0_17, %c0_18], %30 {strides = array<i32>} : memref<1x4x8x8xbf16, #tpu.memory_space<vmem>>, vector<1x4x8x8xbf16>,
    return
  }
  func.func @transform_0(%arg0: i32, %arg1: i32) -> i32 {
    %c0_i32 = arith.constant 0 : i32
    %c0_i32_0 = arith.constant 0 : i32
    return %c0_i32 : i32
  }
  func.func @transform_1(%arg0: i32, %arg1: i32) -> (i32, i32, i32) {
    %c0_i32 = arith.constant 0 : i32
    %c0_i32_0 = arith.constant 0 : i32
    return %arg0, %arg1, %c0_i32 : i32, i32, i32
  }
  func.func @transform_2(%arg0: i32, %arg1: i32) -> (i32, i32) {
    %c0_i32 = arith.constant 0 : i32
    %c0_i32_0 = arith.constant 0 : i32
    %c0_i32_1 = arith.constant 0 : i32
    return %c0_i32, %c0_i32_0 : i32, i32
  }
  func.func @transform_3(%arg0: i32, %arg1: i32) -> (i32, i32) {
    %c0_i32 = arith.constant 0 : i32
    %c0_i32_0 = arith.constant 0 : i32
    %c0_i32_1 = arith.constant 0 : i32
    return %c0_i32, %c0_i32_0 : i32, i32
  }
  func.func @transform_4(%arg0: i32, %arg1: i32) -> (i32, i32, i32, i32) {
    %c0_i32 = arith.constant 0 : i32
    %c0_i32_0 = arith.constant 0 : i32
    %c0_i32_1 = arith.constant 0 : i32
    return %arg0, %c0_i32, %arg1, %c0_i32_0 : i32, i32, i32, i32
  }
  func.func @transform_5(%arg0: i32, %arg1: i32) -> (i32, i32, i32, i32) {
    %c0_i32 = arith.constant 0 : i32
    %c0_i32_0 = arith.constant 0 : i32
    %c0_i32_1 = arith.constant 0 : i32
    return %arg0, %c0_i32, %arg1, %c0_i32_0 : i32, i32, i32, i32
  }
  func.func @transform_6(%arg0: i32, %arg1: i32) -> (i32, i32, i32, i32) {
    %c0_i32 = arith.constant 0 : i32
    %c0_i32_0 = arith.constant 0 : i32
    %c0_i32_1 = arith.constant 0 : i32
    return %arg0, %c0_i32, %arg1, %c0_i32_0 : i32, i32, i32, i32
  }
}

module attributes {stable_mosaic.version = 11 : i64} {
  func.func @_flash_attn_kernel(%arg0: i32, %arg1: i32, %arg2: i32, %arg3: memref<4x1x1xf32, #tpu.memory_space<vmem>>, %arg4: memref<1x4x8x8xbf16, #tpu.memory_space<vmem>>, %arg5: memref<1x4x8x8xbf16, #tpu.memory_space<vmem>>, %arg6: memref<1x4x8x8xbf16, #tpu.memory_space<vmem>>, %arg7: memref<4x8x32xbf16, #tpu.memory_space<vmem>>, %arg8: memref<1x32xf32, #tpu.memory_space<vmem>>, %arg9: memref<1x8x32xf32, #tpu.memory_space<vmem>>, %arg10: memref<4x8x1xf32, #tpu.memory_space<vmem>>, %arg11: memref<4x8x1xf32, #tpu.memory_space<vmem>>, %arg12: memref<4x8x8xf32, #tpu.memory_space<vmem>>) attributes {dimension_semantics = [#tpu.dimension_semantics<parallel>, #tpu.dimension_semantics<parallel>, #tpu.dimension_semantics<arbitrary>], iteration_bounds = array<i64: 2, 1, 1>, scalar_prefetch = 0 : i64, scratch_operands = 3 : i64, tpu.core_type = #tpu.core_type<tc>, window_params = [{pipeline_mode = #tpu.pipeline_mode<synchronous>, transform_indices = @transform_0, window_bounds = array<i64: 4, 1, 1>}, {transform_indices = @transform_1, window_bounds = array<i64: 1, 4, 8, 8>}, {transform_indices = @transform_2, window_bounds = array<i64: 1, 4, 8, 8>}, {transform_indices = @transform_3, window_bounds = array<i64: 1, 4, 8, 8>}, {pipeline_mode = #tpu.pipeline_mode<synchronous>, transform_indices = @transform_4, window_bounds = array<i64: 4, 8, 32>}, {pipeline_mode = #tpu.pipeline_mode<synchronous>, transform_indices = @transform_5, window_bounds = array<i64: 1, 32>}, {transform_indices = @transform_6, window_bounds = array<i64: 1, 8, 32>}]} {
    %c0_i32 = arith.constant 0 : i32
    %0 = arith.cmpi eq, %arg2, %c0_i32 : i32
    %1 = arith.extui %0 : i1 to i32
    %c0_i32_0 = arith.constant 0 : i32
    %2 = arith.cmpi ne, %1, %c0_i32_0 : i32
    scf.if %2 {
      %cst = arith.constant 0xFF800000 : f32
      %12 = vector.broadcast %cst : f32 to vector<4x8x1xf32>
      %c0 = arith.constant 0 : index
      %c0_5 = arith.constant 0 : index
      %c0_6 = arith.constant 0 : index
      %13 = vector.load %arg10[%c0, %c0_5, %c0_6] : memref<4x8x1xf32, #tpu.memory_space<vmem>>, vector<4x8x1xf32>
      tpu.vector_store %arg10[%c0, %c0_5, %c0_6], %12 {strides = array<i32>} : memref<4x8x1xf32, #tpu.memory_space<vmem>>, vector<4x8x1xf32>,
      %cst_7 = arith.constant 0.000000e+00 : f32
      %14 = vector.broadcast %cst_7 : f32 to vector<4x8x1xf32>
      %c0_8 = arith.constant 0 : index
      %c0_9 = arith.constant 0 : index
      %c0_10 = arith.constant 0 : index
      %15 = vector.load %arg11[%c0_8, %c0_9, %c0_10] : memref<4x8x1xf32, #tpu.memory_space<vmem>>, vector<4x8x1xf32>
      tpu.vector_store %arg11[%c0_8, %c0_9, %c0_10], %14 {strides = array<i32>} : memref<4x8x1xf32, #tpu.memory_space<vmem>>, vector<4x8x1xf32>,
      %cst_11 = arith.constant 0.000000e+00 : f32
      %16 = vector.broadcast %cst_11 : f32 to vector<4x8x8xf32>
      %c0_12 = arith.constant 0 : index
      %c0_13 = arith.constant 0 : index
      %c0_14 = arith.constant 0 : index
      %17 = vector.load %arg12[%c0_12, %c0_13, %c0_14] : memref<4x8x8xf32, #tpu.memory_space<vmem>>, vector<4x8x8xf32>
      tpu.vector_store %arg12[%c0_12, %c0_13, %c0_14], %16 {strides = array<i32>} : memref<4x8x8xf32, #tpu.memory_space<vmem>>, vector<4x8x8xf32>,
    } else {
    }
    %c8_i32 = arith.constant 8 : i32
    %3 = arith.muli %arg2, %c8_i32 : i32
    %c8_i32_1 = arith.constant 8 : i32
    %4 = arith.muli %arg1, %c8_i32_1 : i32
    %c7_i32 = arith.constant 7 : i32
    %5 = arith.addi %4, %c7_i32 : i32
    %6 = arith.cmpi sle, %3, %5 : i32
    %7 = arith.extui %6 : i1 to i32
    %c0_i32_2 = arith.constant 0 : i32
    %8 = arith.cmpi ne, %7, %c0_i32_2 : i32
    scf.if %8 {
      %c0 = arith.constant 0 : index
      %c0_5 = arith.constant 0 : index
      %c0_6 = arith.constant 0 : index
      %c0_7 = arith.constant 0 : index
      %12 = vector.load %arg4[%c0, %c0_5, %c0_6, %c0_7] : memref<1x4x8x8xbf16, #tpu.memory_space<vmem>>, vector<1x4x8x8xbf16>
      %13 = vector.shape_cast %12 : vector<1x4x8x8xbf16> to vector<4x8x8xbf16>
      %c0_8 = arith.constant 0 : index
      %c0_9 = arith.constant 0 : index
      %c0_10 = arith.constant 0 : index
      %c0_11 = arith.constant 0 : index
      %14 = vector.load %arg5[%c0_8, %c0_9, %c0_10, %c0_11] : memref<1x4x8x8xbf16, #tpu.memory_space<vmem>>, vector<1x4x8x8xbf16>
      %15 = vector.shape_cast %14 : vector<1x4x8x8xbf16> to vector<4x8x8xbf16>
      %c0_12 = arith.constant 0 : index
      %c0_13 = arith.constant 0 : index
      %c0_14 = arith.constant 0 : index
      %c0_15 = arith.constant 0 : index
      %16 = vector.load %arg6[%c0_12, %c0_13, %c0_14, %c0_15] : memref<1x4x8x8xbf16, #tpu.memory_space<vmem>>, vector<1x4x8x8xbf16>
      %17 = vector.shape_cast %16 : vector<1x4x8x8xbf16> to vector<4x8x8xbf16>
      "tpu.trace_start"() <{level = 10 : i32, message = "hqd,hkd->hqk"}> : () -> ()
      %cst = arith.constant dense<0.000000e+00> : vector<4x8x8xf32>
      %18 = tpu.matmul %13, %15, %cst {dimension_numbers = #tpu.dot_dimension_numbers<[2], [2], [1], [1], [0, 0, 0, 1, 1, 1], [0], [0]>} : vector<4x8x8xbf16>, vector<4x8x8xbf16>, vector<4x8x8xf32> -> vector<4x8x8xf32>
      "tpu.trace_stop"() : () -> ()
      %c0_16 = arith.constant 0 : index
      %c0_17 = arith.constant 0 : index
      %c0_18 = arith.constant 0 : index
      %19 = vector.load %arg3[%c0_16, %c0_17, %c0_18] : memref<4x1x1xf32, #tpu.memory_space<vmem>>, vector<4x1x1xf32>
      %20 = vector.broadcast %19 : vector<4x1x1xf32> to vector<4x8x8xf32>
      %21 = arith.cmpf olt, %18, %20 : vector<4x8x8xf32>
      %cst_19 = arith.constant -1.000000e+04 : f32
      %22 = vector.broadcast %cst_19 : f32 to vector<4x8x8xf32>
      %23 = arith.select %21, %22, %18 : vector<4x8x8xi1>, vector<4x8x8xf32>
      %c8_i32_20 = arith.constant 8 : i32
      %24 = arith.muli %arg1, %c8_i32_20 : i32
      %25 = tpu.iota {dimensions = array<i32: 0>} : vector<8x8xi32>
      %26 = vector.broadcast %24 : i32 to vector<8x8xi32>
      %27 = arith.addi %26, %25 : vector<8x8xi32>
      %c8_i32_21 = arith.constant 8 : i32
      %28 = arith.muli %arg2, %c8_i32_21 : i32
      %29 = tpu.iota {dimensions = array<i32: 1>} : vector<8x8xi32>
      %30 = vector.broadcast %28 : i32 to vector<8x8xi32>
      %31 = arith.addi %30, %29 : vector<8x8xi32>
      %32 = arith.cmpi sgt, %31, %27 : vector<8x8xi32>
      %cst_22 = arith.constant -1.000000e+30 : f32
      %cst_23 = arith.constant 0.000000e+00 : f32
      %33 = vector.broadcast %cst_22 : f32 to vector<8x8xf32>
      %34 = vector.broadcast %cst_23 : f32 to vector<8x8xf32>
      %35 = arith.select %32, %33, %34 : vector<8x8xi1>, vector<8x8xf32>
      %36 = vector.shape_cast %35 : vector<8x8xf32> to vector<1x8x8xf32>
      %37 = vector.broadcast %36 : vector<1x8x8xf32> to vector<4x8x8xf32>
      %38 = arith.addf %23, %37 : vector<4x8x8xf32>
      %c0_24 = arith.constant 0 : index
      %c0_25 = arith.constant 0 : index
      %c0_26 = arith.constant 0 : index
      %39 = vector.load %arg10[%c0_24, %c0_25, %c0_26] : memref<4x8x1xf32, #tpu.memory_space<vmem>>, vector<4x8x1xf32>
      %cst_27 = arith.constant dense<0xFF800000> : vector<4x8xf32>
      %40 = vector.multi_reduction <maximumf>, %38, %cst_27 [2] : vector<4x8x8xf32> to vector<4x8xf32>
      %41 = vector.shape_cast %40 : vector<4x8xf32> to vector<4x8x1xf32>
      %42 = arith.maximumf %39, %41 : vector<4x8x1xf32>
      %43 = arith.subf %39, %42 : vector<4x8x1xf32>
      %44 = math.exp %43 : vector<4x8x1xf32>
      %45 = vector.broadcast %42 : vector<4x8x1xf32> to vector<4x8x8xf32>
      %46 = arith.subf %38, %45 : vector<4x8x8xf32>
      %47 = math.exp %46 : vector<4x8x8xf32>
      %c0_28 = arith.constant 0 : index
      %c0_29 = arith.constant 0 : index
      %c0_30 = arith.constant 0 : index
      %48 = vector.load %arg11[%c0_28, %c0_29, %c0_30] : memref<4x8x1xf32, #tpu.memory_space<vmem>>, vector<4x8x1xf32>
      %49 = arith.mulf %44, %48 : vector<4x8x1xf32>
      %cst_31 = arith.constant dense<0.000000e+00> : vector<4x8xf32>
      %50 = vector.multi_reduction <add>, %47, %cst_31 [2] : vector<4x8x8xf32> to vector<4x8xf32>
      %51 = vector.shape_cast %50 : vector<4x8xf32> to vector<4x8x1xf32>
      %52 = arith.addf %49, %51 : vector<4x8x1xf32>
      %c0_32 = arith.constant 0 : index
      %c0_33 = arith.constant 0 : index
      %c0_34 = arith.constant 0 : index
      %53 = vector.load %arg11[%c0_32, %c0_33, %c0_34] : memref<4x8x1xf32, #tpu.memory_space<vmem>>, vector<4x8x1xf32>
      tpu.vector_store %arg11[%c0_32, %c0_33, %c0_34], %52 {strides = array<i32>} : memref<4x8x1xf32, #tpu.memory_space<vmem>>, vector<4x8x1xf32>,
      %c0_35 = arith.constant 0 : index
      %c0_36 = arith.constant 0 : index
      %c0_37 = arith.constant 0 : index
      %54 = vector.load %arg12[%c0_35, %c0_36, %c0_37] : memref<4x8x8xf32, #tpu.memory_space<vmem>>, vector<4x8x8xf32>
      %55 = vector.broadcast %44 : vector<4x8x1xf32> to vector<4x8x8xf32>
      %56 = arith.mulf %55, %54 : vector<4x8x8xf32>
      %57 = arith.truncf %47 : vector<4x8x8xf32> to vector<4x8x8xbf16>
      "tpu.trace_start"() <{level = 10 : i32, message = "hqk,hkd->hqd"}> : () -> ()
      %cst_38 = arith.constant dense<0.000000e+00> : vector<4x8x8xf32>
      %58 = tpu.matmul %57, %17, %cst_38 {dimension_numbers = #tpu.dot_dimension_numbers<[2], [1], [1], [2], [0, 0, 0, 1, 1, 2], [0], [0]>} : vector<4x8x8xbf16>, vector<4x8x8xbf16>, vector<4x8x8xf32> -> vector<4x8x8xf32>
      "tpu.trace_stop"() : () -> ()
      %59 = arith.addf %56, %58 : vector<4x8x8xf32>
      %c0_39 = arith.constant 0 : index
      %c0_40 = arith.constant 0 : index
      %c0_41 = arith.constant 0 : index
      %60 = vector.load %arg12[%c0_39, %c0_40, %c0_41] : memref<4x8x8xf32, #tpu.memory_space<vmem>>, vector<4x8x8xf32>
      tpu.vector_store %arg12[%c0_39, %c0_40, %c0_41], %59 {strides = array<i32>} : memref<4x8x8xf32, #tpu.memory_space<vmem>>, vector<4x8x8xf32>,
      %c0_42 = arith.constant 0 : index
      %c0_43 = arith.constant 0 : index
      %c0_44 = arith.constant 0 : index
      %61 = vector.load %arg10[%c0_42, %c0_43, %c0_44] : memref<4x8x1xf32, #tpu.memory_space<vmem>>, vector<4x8x1xf32>
      tpu.vector_store %arg10[%c0_42, %c0_43, %c0_44], %42 {strides = array<i32>} : memref<4x8x1xf32, #tpu.memory_space<vmem>>, vector<4x8x1xf32>,
    } else {
    }
    %c0_i32_3 = arith.constant 0 : i32
    %9 = arith.cmpi eq, %arg2, %c0_i32_3 : i32
    %10 = arith.extui %9 : i1 to i32
    %c0_i32_4 = arith.constant 0 : i32
    %11 = arith.cmpi ne, %10, %c0_i32_4 : i32
    scf.if %11 {
      %c0 = arith.constant 0 : index
      %c0_5 = arith.constant 0 : index
      %c0_6 = arith.constant 0 : index
      %12 = vector.load %arg12[%c0, %c0_5, %c0_6] : memref<4x8x8xf32, #tpu.memory_space<vmem>>, vector<4x8x8xf32>
      %c0_7 = arith.constant 0 : index
      %c0_8 = arith.constant 0 : index
      %c0_9 = arith.constant 0 : index
      %13 = vector.load %arg11[%c0_7, %c0_8, %c0_9] : memref<4x8x1xf32, #tpu.memory_space<vmem>>, vector<4x8x1xf32>
      %14 = tpu.reciprocal %13 {approx = true} : vector<4x8x1xf32> -> vector<4x8x1xf32>
      %15 = vector.broadcast %14 : vector<4x8x1xf32> to vector<4x8x8xf32>
      %16 = arith.mulf %12, %15 : vector<4x8x8xf32>
      %17 = arith.truncf %16 : vector<4x8x8xf32> to vector<4x8x8xbf16>
      %18 = vector.extract_strided_slice %17 {offsets = [0, 0, 0], sizes = [1, 8, 8], strides = [1, 1, 1]} : vector<4x8x8xbf16> to vector<1x8x8xbf16>
      %19 = vector.shape_cast %18 : vector<1x8x8xbf16> to vector<8x8xbf16>
      %c0_10 = arith.constant 0 : index
      %c0_11 = arith.constant 0 : index
      %c0_12 = arith.constant 0 : index
      %20 = vector.load %arg7[%c0_10, %c0_11, %c0_12] : memref<4x8x32xbf16, #tpu.memory_space<vmem>>, vector<1x8x32xbf16>
      %21 = vector.shape_cast %20 : vector<1x8x32xbf16> to vector<8x32xbf16>
      %cst = arith.constant dense<0.000000e+00> : vector<8x32xf32>
      %22 = tpu.matmul %19, %21, %cst {dimension_numbers = #tpu.dot_dimension_numbers<[1], [0], [0], [1], [0, 0, 1, 1], [], []>} : vector<8x8xbf16>, vector<8x32xbf16>, vector<8x32xf32> -> vector<8x32xf32>
      %23 = vector.extract_strided_slice %17 {offsets = [1, 0, 0], sizes = [1, 8, 8], strides = [1, 1, 1]} : vector<4x8x8xbf16> to vector<1x8x8xbf16>
      %24 = vector.shape_cast %23 : vector<1x8x8xbf16> to vector<8x8xbf16>
      %c1 = arith.constant 1 : index
      %c0_13 = arith.constant 0 : index
      %c0_14 = arith.constant 0 : index
      %25 = vector.load %arg7[%c1, %c0_13, %c0_14] : memref<4x8x32xbf16, #tpu.memory_space<vmem>>, vector<1x8x32xbf16>
      %26 = vector.shape_cast %25 : vector<1x8x32xbf16> to vector<8x32xbf16>
      %cst_15 = arith.constant dense<0.000000e+00> : vector<8x32xf32>
      %27 = tpu.matmul %24, %26, %cst_15 {dimension_numbers = #tpu.dot_dimension_numbers<[1], [0], [0], [1], [0, 0, 1, 1], [], []>} : vector<8x8xbf16>, vector<8x32xbf16>, vector<8x32xf32> -> vector<8x32xf32>
      %28 = arith.addf %22, %27 : vector<8x32xf32>
      %29 = vector.extract_strided_slice %17 {offsets = [2, 0, 0], sizes = [1, 8, 8], strides = [1, 1, 1]} : vector<4x8x8xbf16> to vector<1x8x8xbf16>
      %30 = vector.shape_cast %29 : vector<1x8x8xbf16> to vector<8x8xbf16>
      %c2 = arith.constant 2 : index
      %c0_16 = arith.constant 0 : index
      %c0_17 = arith.constant 0 : index
      %31 = vector.load %arg7[%c2, %c0_16, %c0_17] : memref<4x8x32xbf16, #tpu.memory_space<vmem>>, vector<1x8x32xbf16>
      %32 = vector.shape_cast %31 : vector<1x8x32xbf16> to vector<8x32xbf16>
      %cst_18 = arith.constant dense<0.000000e+00> : vector<8x32xf32>
      %33 = tpu.matmul %30, %32, %cst_18 {dimension_numbers = #tpu.dot_dimension_numbers<[1], [0], [0], [1], [0, 0, 1, 1], [], []>} : vector<8x8xbf16>, vector<8x32xbf16>, vector<8x32xf32> -> vector<8x32xf32>
      %34 = arith.addf %28, %33 : vector<8x32xf32>
      %35 = vector.extract_strided_slice %17 {offsets = [3, 0, 0], sizes = [1, 8, 8], strides = [1, 1, 1]} : vector<4x8x8xbf16> to vector<1x8x8xbf16>
      %36 = vector.shape_cast %35 : vector<1x8x8xbf16> to vector<8x8xbf16>
      %c3 = arith.constant 3 : index
      %c0_19 = arith.constant 0 : index
      %c0_20 = arith.constant 0 : index
      %37 = vector.load %arg7[%c3, %c0_19, %c0_20] : memref<4x8x32xbf16, #tpu.memory_space<vmem>>, vector<1x8x32xbf16>
      %38 = vector.shape_cast %37 : vector<1x8x32xbf16> to vector<8x32xbf16>
      %cst_21 = arith.constant dense<0.000000e+00> : vector<8x32xf32>
      %39 = tpu.matmul %36, %38, %cst_21 {dimension_numbers = #tpu.dot_dimension_numbers<[1], [0], [0], [1], [0, 0, 1, 1], [], []>} : vector<8x8xbf16>, vector<8x32xbf16>, vector<8x32xf32> -> vector<8x32xf32>
      %40 = arith.addf %34, %39 : vector<8x32xf32>
      %c0_22 = arith.constant 0 : index
      %c0_23 = arith.constant 0 : index
      %41 = vector.load %arg8[%c0_22, %c0_23] : memref<1x32xf32, #tpu.memory_space<vmem>>, vector<1x32xf32>
      %42 = vector.broadcast %41 : vector<1x32xf32> to vector<8x32xf32>
      %43 = arith.addf %40, %42 : vector<8x32xf32>
      %c0_24 = arith.constant 0 : index
      %c0_25 = arith.constant 0 : index
      %c0_26 = arith.constant 0 : index
      %44 = vector.load %arg9[%c0_24, %c0_25, %c0_26] : memref<1x8x32xf32, #tpu.memory_space<vmem>>, vector<1x8x32xf32>
      %45 = vector.shape_cast %44 : vector<1x8x32xf32> to vector<8x32xf32>
      %46 = vector.shape_cast %43 : vector<8x32xf32> to vector<1x8x32xf32>
      tpu.vector_store %arg9[%c0_24, %c0_25, %c0_26], %46 {strides = array<i32>} : memref<1x8x32xf32, #tpu.memory_space<vmem>>, vector<1x8x32xf32>,
    } else {
    }
    return
  }
  func.func @transform_0(%arg0: i32, %arg1: i32, %arg2: i32) -> (i32, i32, i32) {
    %c0_i32 = arith.constant 0 : i32
    %c0_i32_0 = arith.constant 0 : i32
    %c0_i32_1 = arith.constant 0 : i32
    %c0_i32_2 = arith.constant 0 : i32
    return %c0_i32, %c0_i32_0, %c0_i32_1 : i32, i32, i32
  }
  func.func @transform_1(%arg0: i32, %arg1: i32, %arg2: i32) -> (i32, i32, i32, i32) {
    %c0_i32 = arith.constant 0 : i32
    %c0_i32_0 = arith.constant 0 : i32
    %c0_i32_1 = arith.constant 0 : i32
    return %arg0, %c0_i32, %arg1, %c0_i32_0 : i32, i32, i32, i32
  }
  func.func @transform_2(%arg0: i32, %arg1: i32, %arg2: i32) -> (i32, i32, i32, i32) {
    %c0_i32 = arith.constant 0 : i32
    %c0_i32_0 = arith.constant 0 : i32
    %c0_i32_1 = arith.constant 0 : i32
    return %arg0, %c0_i32, %arg2, %c0_i32_0 : i32, i32, i32, i32
  }
  func.func @transform_3(%arg0: i32, %arg1: i32, %arg2: i32) -> (i32, i32, i32, i32) {
    %c0_i32 = arith.constant 0 : i32
    %c0_i32_0 = arith.constant 0 : i32
    %c0_i32_1 = arith.constant 0 : i32
    return %arg0, %c0_i32, %arg2, %c0_i32_0 : i32, i32, i32, i32
  }
  func.func @transform_4(%arg0: i32, %arg1: i32, %arg2: i32) -> (i32, i32, i32) {
    %c0_i32 = arith.constant 0 : i32
    %c0_i32_0 = arith.constant 0 : i32
    %c0_i32_1 = arith.constant 0 : i32
    %c0_i32_2 = arith.constant 0 : i32
    return %c0_i32, %c0_i32_0, %c0_i32_1 : i32, i32, i32
  }
  func.func @transform_5(%arg0: i32, %arg1: i32, %arg2: i32) -> (i32, i32) {
    %c0_i32 = arith.constant 0 : i32
    %c0_i32_0 = arith.constant 0 : i32
    %c0_i32_1 = arith.constant 0 : i32
    return %c0_i32, %c0_i32_0 : i32, i32
  }
  func.func @transform_6(%arg0: i32, %arg1: i32, %arg2: i32) -> (i32, i32, i32) {
    %c0_i32 = arith.constant 0 : i32
    %c0_i32_0 = arith.constant 0 : i32
    return %arg0, %arg1, %c0_i32 : i32, i32, i32
  }
}

</mosaic_0001>

<bundles_post_ra>
// kernel: thresholded_attention.2
= control target key start
LH: loop header
LB: loop body
LE: loop exit
PB: predicated region body
PF: predicated region fallthrough
CT: control target
= control target key end

     0   :  { %s1250_s23 = smov 0   ;;  %s1252_s24 = smov 0   ;;  %s1389_s0 = inlined_call_operand.<no memory space> [shape: f32[1], index: 0, kind: input, shape index: {}]   ;;  %s1390_s1 = inlined_call_operand.vmem [shape: bf16[2,8,32], index: 1, kind: input, shape index: {}]   ;;  %s1391_s2 = inlined_call_operand.vmem [shape: bf16[32,96], index: 2, kind: input, shape index: {}]   ;;  %s1392_s3 = inlined_call_operand.vmem [shape: f32[1,96], index: 3, kind: input, shape index: {}]   ;;  %s1393_s4 = inlined_call_operand.vmem [shape: bf16[2,4,8,8], index: 4, kind: output, shape index: {0}]   ;;  %s1394_s5 = inlined_call_operand.vmem [shape: bf16[2,4,8,8], index: 5, kind: output, shape index: {1}]   ;;  %s1395_s6 = inlined_call_operand.vmem [shape: bf16[2,4,8,8], index: 6, kind: output, shape index: {2}]  }
   0x1   :  { %12 = sst [smem:[#allocation2]] %s1389_s0  ;;  %s1254_s25 = smov 0  }
   0x2 LB: > { %s30_s0 = sadd.s32 1, %s1196_s24  ;;  %p1114_p0 = scmp.ge.s32.totalorder %s1200_s25, 1  ;;  %s1200_s25 = sphi %s1254_s25, %s18_s25   ;;  %s1196_s24 = sphi %s1252_s24, %s1397_s24   ;;  %s1192_s23 = sphi %s1250_s23, %s1396_s23  }
   0x3   : > { %p32_p1 = scmp.ge.s32.totalorder %s30_s0, 2  ;;  %p240_p2 = scmp.lt.s32.totalorder %s1200_s25, 3 }
   0x5   : > { %s1399_s0 = smov (%p32_p1, %s30_s0), 0  ;;  %p241_p3 = pnand %p1114_p0, %p240_p2 }
   0x6   : > { %v1176_v0 = vld [vmem:[%s1391_s2] sm:$0xff] (!%p241_p3)   ;;  %v1202_v1 = vmov (!%p241_p3), 0.0   ;;  %v1177_v2 = vld [vmem:[%s1391_s2 + $0x8] sm:$0xff] (!%p241_p3)   ;;  %vm1203_vm0 = vmmov (!%p241_p3), 0   ;;  %p291_p4 = scmp.lt.s32.totalorder (!%p241_p3), %s1192_s23, 1  ;;  %vm347_vm1 = vcmask (!%p241_p3), 261120   ;;  %v405_v16 = vlaneseq (!%p241_p3) }
   0x7   : > { %244 = sbr.rel (%p241_p3) target bundleno = 508 (0x1fc), region = 36  ;;  %1134 = vmatprep.subr.bf16.mxu0 (!%p241_p3), %v1202_v1  ;;  %1138 = vmatprep.mubr.msk.bf16.mxu0 (!%p241_p3), %vm1203_vm0, %v1202_v1  ;;  %s391_s10 = sld [smem:[#allocation2]] (!%p241_p3)  ;;  %v1122_v4 = vld [vmem:[%s1392_s3] ss:$0 sm:$0xff] (!%p241_p3)  ;;  %v1209_v14 = vmov (!%p241_p3), 1983009808  }
   0x8   : > { %1135 = vmatpush3.bf16.msra.mxu0 (!%p241_p3), %v1176_v0  ;;  %s1204_s13 = smov (!%p241_p3), 104   ;;  %s1205_s14 = smov (!%p241_p3), 120   ;;  %v403_v15 = vunpack.c.l.s4 (!%p241_p3), %v1209_v14  ;;  %v406_v20 = vshrl.u32 (!%p241_p3), %v405_v16, 7  ;;  %v1210_v23 = vmov (!%p241_p3), 1934713408   ;;  %v1211_v42 = vmov (!%p241_p3), 0  }
   0x9   : > { %1136 = vmatprep.subr.bf16.mxu0 (!%p241_p3), %v1202_v1  ;;  %s1206_s15 = smov (!%p241_p3), 112   ;;  %s1207_s16 = smov (!%p241_p3), 96   ;;  %v420_v24 = vunpack.c.l.s4 (!%p241_p3), %v1210_v23  ;;  %vm567_vm2 = vcmask (!%p241_p3), 60416  }
   0xa   : > { %s1208_s17 = smov (!%p241_p3), 64   ;;  %v404_v19 = vunpack.c.0.s8 (!%p241_p3), %v403_v15 }
   0xb   : > { %v421_v27 = vunpack.c.0.s8 (!%p241_p3), %v420_v24 }
   0xc   : > { %1137 = vmatpush3.bf16.msra.mxu0 (!%p241_p3), %v1177_v2  ;;  %v1283_v25 = vsub.s32 (!%p241_p3), %v404_v19, %v406_v20 }
   0xd   : > { %v392_v6 = vstv (!%p241_p3), %s391_s10  ;;  %v1289_v31 = vsub.s32 (!%p241_p3), %v421_v27, %v406_v20 }
   0xe   : > { %s1401_s23 = smov (!%p291_p4, %s1192_s23), 1 }
   0xf   : > { %s1115_s30 = sshll.u32 %s1401_s23, 2  ;;  %s1309_s18 = sshll.u32 %s1401_s23, 4 }
  0x10   : > { %s297_s9 = scalar_lea.vmem %s1390_s1, %s1115_s30  ;;  %s305_s21 = scalar_lea.vmem %s1393_s4, %s1309_s18 }
  0x11   : > { %v323_v3 = vld [vmem:[%s297_s9] sm:$0xf]  ;;  %s313_s26 = scalar_lea.vmem %s1394_s5, %s1309_s18  ;;  %s321_s29 = scalar_lea.vmem %s1395_s6, %s1309_s18 }
  0x12   : > { %1139 = vmatmul.mubr.msk.bf16.vlgmr.msra.gmra.mrb[0].mxu0 %vm347_vm1, %v323_v3 }
  0xe5   : > { %v385_v5 = vpop.f32.mrb[0].mxu0 }
  0xe6   : > { %v386_v7 = vadd.f32 %v1122_v4, %v385_v5  ;;  %v1140_v8 = vpop.f32.mrb[1].mxu0 }
  0xe7   : > { %v388_v9 = vpop.f32.mrb[2].mxu0 }
  0xe8   : > { %v393_v10 = vmul.f32 %v392_v6, %v386_v7  ;;  %v572_v11 = vpack.c.bf16 %v386_v7, %v386_v7  ;;  %v1141_v12 = vpop.f32.mrb[3].mxu0 }
  0xea   : > { %578 = vrot.lane.b32.xlu1 %v572_v11, %s1204_s13  ;;  %574 = vrot.lane.b32.xlu0 %v572_v11, %s1205_s14  ;;  %v394_v13 = vpack.c.bf16 %v393_v10, %v393_v10 }
  0xec   : > { %v408_v37 = vrot.slane %v394_v13, %v1283_v25 }
  0xee   : > { %576 = vrot.lane.b32.xlu0 %v572_v11, %s1206_s15  ;;  %396 = vrot.lane.b32.xlu1 %v394_v13, %s1205_s14 }
  0xf2   : > { %580 = vrot.lane.b32.xlu0 %v572_v11, %s1207_s16  ;;  %400 = vrot.lane.b32.xlu1 %v394_v13, %s1204_s13 }
  0xf6   : > { %758 = vrot.lane.b32.xlu0 %v572_v11, %s1208_s17 }
  0xfa   : > { %398 = vrot.lane.b32.xlu0 %v394_v13, %s1206_s15 }
 0x15c   : > { %v579_v17 = vpop.permute.xlu1 %578  ;;  %v575_v18 = vpop.permute.xlu0 %574 }
 0x15d   : > { %582 = vrot.lane.b32.xlu1 %v575_v18, %s1207_s16 }
 0x160   : > { %v577_v21 = vpop.permute.xlu0 %576  ;;  %v397_v22 = vpop.permute.xlu1 %396 }
 0x161   : > { %584 = vrot.lane.b32.xlu0 %v577_v21, %s1207_s16  ;;  %586 = vrot.lane.b32.xlu1 %v579_v17, %s1207_s16  ;;  %v442_v30 = vrot.slane %v397_v22, %v1283_v25 }
 0x164   : > { %v1285_v26 = vpop.permute.xlu0 %580  ;;  %v401_v28 = vpop.permute.xlu1 %400 }
 0x165   : > { %v450_v29 = vrot.slane %v401_v28, %v1283_v25  ;;  %762 = vrot.lane.b32.xlu0 %v577_v21, %s1208_s17  ;;  %760 = vrot.lane.b32.xlu1 %v575_v18, %s1208_s17  ;;  %v595_v28 = vrot.slane %v1285_v26, %v1283_v25 }
 0x167   : > { %v451_v32 = vcombine.low %v442_v30, %v450_v29  ;;  %v452_v34 = vcombine.high %v442_v30, %v450_v29 }
 0x168   : > { %v1291_v33 = vpop.permute.xlu0 %758 }
 0x169   : > { %764 = vrot.lane.b32.xlu1 %v579_v17, %s1208_s17  ;;  %v459_v35 = vrot.slane %v451_v32, %v1289_v31  ;;  %v466_v39 = vrot.slane %v452_v34, %v1289_v31 }
 0x16b   : > { %v467_v43 = vcombine.high %v459_v35, %v1211_v42  ;;  %v468_v46 = vcombine.high %v466_v39, %v1211_v42  ;;  %v474_v47 = vshrl.u32 %v459_v35, 16  ;;  %v490_v53 = vshrl.u32 %v466_v39, 16 }
 0x16c   : > { %v399_v36 = vpop.permute.xlu0 %398 }
 0x16d   : > { %v416_v38 = vrot.slane %v399_v36, %v1283_v25  ;;  %v482_v52 = vshrl.u32 %v467_v43, 16  ;;  %v498_v60 = vshrl.u32 %v468_v46, 16 }
 0x16f   : > { %v417_v40 = vcombine.low %v408_v37, %v416_v38  ;;  %v418_v41 = vcombine.high %v408_v37, %v416_v38 }
 0x171   : > { %v425_v44 = vrot.slane %v417_v40, %v1289_v31  ;;  %v432_v45 = vrot.slane %v418_v41, %v1289_v31 }
 0x173   : > { %v433_v48 = vcombine.high %v425_v44, %v1211_v42  ;;  %v434_v49 = vcombine.high %v432_v45, %v1211_v42  ;;  %v471_v50 = vpack.i.b16 %v459_v35, %v425_v44  ;;  %v473_v51 = vshrl.u32 %v425_v44, 16 }
 0x174   : > { %v487_v54 = vpack.i.b16 %v466_v39, %v432_v45  ;;  %v489_v55 = vshrl.u32 %v432_v45, 16  ;;  %v773_v44 = vrot.slane %v1291_v33, %v1283_v25 }
 0x175   : > { %v475_v56 = vpack.i.b16 %v474_v47, %v473_v51  ;;  %v479_v57 = vpack.i.b16 %v467_v43, %v433_v48  ;;  %v481_v58 = vshrl.u32 %v433_v48, 16  ;;  %v495_v59 = vpack.i.b16 %v468_v46, %v434_v49 }
 0x176   : > { %v491_v61 = vpack.i.b16 %v490_v53, %v489_v55  ;;  %v497_v62 = vshrl.u32 %v434_v49, 16  ;;  %v501_v63 = vcombine.low %v471_v50, %v487_v54 }
 0x177   : > { %v483_v0 = vpack.i.b16 %v482_v52, %v481_v58  ;;  %v509_v1 = vcombine.low %v479_v57, %v495_v59 }
 0x178   : > { %v499_v2 = vpack.i.b16 %v498_v60, %v497_v62  ;;  %v526_v3 = vcombine.low %v475_v56, %v491_v61  ;;  %v508_v4 = vrot.slane %v501_v63, %v1283_v25 }
 0x179   : > { %v516_v5 = vrot.slane %v509_v1, %v1283_v25 }
 0x17a   : > { %v534_v6 = vcombine.low %v483_v0, %v499_v2  ;;  %v533_v8 = vrot.slane %v526_v3, %v1283_v25 }
 0x17b   : > { %v517_v7 = vcombine.low %v508_v4, %v516_v5 }
 0x17c   : > { %v541_v9 = vrot.slane %v534_v6, %v1283_v25 }
 0x17d   : > { %v524_v10 = vrot.slane %v517_v7, %v1289_v31 }
 0x17e   : > { %v542_v11 = vcombine.low %v533_v8, %v541_v9 }
 0x17f   : > { %v525_v12 = vcombine.high %v524_v10, %v1211_v42  ;;  %v555_v16 = vshrl.u32 %v524_v10, 16 }
 0x180   : > { %v549_v13 = vrot.slane %v542_v11, %v1289_v31 }
 0x181   : > { %v563_v20 = vshrl.u32 %v525_v12, 16 }
 0x182   : > { %v550_v14 = vcombine.high %v549_v13, %v1211_v42  ;;  %v553_v15 = vpack.i.b16 %v549_v13, %v524_v10  ;;  %v556_v17 = vshrl.u32 %v549_v13, 16 }
 0x184   : > { %v557_v18 = vpack.i.b16 %v556_v17, %v555_v16  ;;  %v561_v19 = vpack.i.b16 %v550_v14, %v525_v12  ;;  %v564_v21 = vshrl.u32 %v550_v14, 16  ;;  %568 = vst.msk [vmem:[%s305_s21] sm:$0xf] %vm567_vm2, %v553_v15 }
 0x186   : > { %v565_v22 = vpack.i.b16 %v564_v21, %v563_v20  ;;  %569 = vst.msk [vmem:[%s305_s21 + $0x4] sm:$0xf] %vm567_vm2, %v557_v18  ;;  %570 = vst.msk [vmem:[%s305_s21 + $0x8] sm:$0xf] %vm567_vm2, %v561_v19 }
 0x188   : > { %571 = vst.msk [vmem:[%s305_s21 + $0xc] sm:$0xf] %vm567_vm2, %v565_v22 }
 0x1cf   : > { %v583_v23 = vpop.permute.xlu1 %582 }
 0x1d0   : > { %v629_v29 = vrot.slane %v583_v23, %v1283_v25 }
 0x1d3   : > { %v585_v24 = vpop.permute.xlu0 %584  ;;  %v587_v27 = vpop.permute.xlu1 %586 }
 0x1d4   : > { %v603_v30 = vrot.slane %v585_v24, %v1283_v25  ;;  %v637_v32 = vrot.slane %v587_v27, %v1283_v25 }
 0x1d6   : > { %v604_v34 = vcombine.low %v595_v28, %v603_v30  ;;  %v605_v35 = vcombine.high %v595_v28, %v603_v30  ;;  %v638_v36 = vcombine.low %v629_v29, %v637_v32  ;;  %v639_v37 = vcombine.high %v629_v29, %v637_v32 }
 0x1d7   : > { %v763_v38 = vpop.permute.xlu0 %762  ;;  %v761_v39 = vpop.permute.xlu1 %760 }
 0x1d8   : > { %v612_v40 = vrot.slane %v604_v34, %v1289_v31  ;;  %v619_v41 = vrot.slane %v605_v35, %v1289_v31  ;;  %v646_v43 = vrot.slane %v638_v36, %v1289_v31  ;;  %v653_v26 = vrot.slane %v639_v37, %v1289_v31 }
 0x1d9   : > { %v781_v45 = vrot.slane %v763_v38, %v1283_v25  ;;  %v807_v46 = vrot.slane %v761_v39, %v1283_v25 }
 0x1da   : > { %v620_v47 = vcombine.high %v612_v40, %v1211_v42  ;;  %v621_v48 = vcombine.high %v619_v41, %v1211_v42  ;;  %v660_v49 = vshrl.u32 %v612_v40, 16  ;;  %v676_v50 = vshrl.u32 %v619_v41, 16 }
 0x1db   : > { %v654_v51 = vcombine.high %v646_v43, %v1211_v42  ;;  %v655_v52 = vcombine.high %v653_v26, %v1211_v42  ;;  %v658_v53 = vpack.i.b16 %v646_v43, %v612_v40  ;;  %v661_v54 = vshrl.u32 %v646_v43, 16  ;;  %v765_v58 = vpop.permute.xlu1 %764 }
 0x1dc   : > { %v668_v55 = vshrl.u32 %v620_v47, 16  ;;  %v684_v56 = vshrl.u32 %v621_v48, 16  ;;  %v674_v57 = vpack.i.b16 %v653_v26, %v619_v41  ;;  %v677_v33 = vshrl.u32 %v653_v26, 16 }
 0x1dd   : > { %v662_v59 = vpack.i.b16 %v661_v54, %v660_v49  ;;  %v666_v60 = vpack.i.b16 %v654_v51, %v620_v47  ;;  %v669_v61 = vshrl.u32 %v654_v51, 16  ;;  %v682_v62 = vpack.i.b16 %v655_v52, %v621_v48 }
 0x1de   : > { %v678_v63 = vpack.i.b16 %v677_v33, %v676_v50  ;;  %v685_v0 = vshrl.u32 %v655_v52, 16  ;;  %v688_v1 = vcombine.low %v658_v53, %v674_v57  ;;  %v782_v2 = vcombine.low %v773_v44, %v781_v45 }
 0x1df   : > { %v670_v3 = vpack.i.b16 %v669_v61, %v668_v55  ;;  %v696_v4 = vcombine.low %v666_v60, %v682_v62  ;;  %v783_v5 = vcombine.high %v773_v44, %v781_v45  ;;  %v815_v6 = vrot.slane %v765_v58, %v1283_v25 }
 0x1e0   : > { %v686_v7 = vpack.i.b16 %v685_v0, %v684_v56  ;;  %v695_v8 = vrot.slane %v688_v1, %v1283_v25  ;;  %v713_v9 = vcombine.low %v662_v59, %v678_v63  ;;  %v790_v10 = vrot.slane %v782_v2, %v1289_v31 }
 0x1e1   : > { %v703_v11 = vrot.slane %v696_v4, %v1283_v25  ;;  %v797_v12 = vrot.slane %v783_v5, %v1289_v31  ;;  %v816_v13 = vcombine.low %v807_v46, %v815_v6  ;;  %v817_v14 = vcombine.high %v807_v46, %v815_v6 }
 0x1e2   : > { %v721_v15 = vcombine.low %v670_v3, %v686_v7  ;;  %v798_v16 = vcombine.high %v790_v10, %v1211_v42  ;;  %v720_v18 = vrot.slane %v713_v9, %v1283_v25  ;;  %v838_v22 = vshrl.u32 %v790_v10, 16 }
 0x1e3   : > { %v704_v17 = vcombine.low %v695_v8, %v703_v11  ;;  %v799_v19 = vcombine.high %v797_v12, %v1211_v42  ;;  %v824_v20 = vrot.slane %v816_v13, %v1289_v31  ;;  %v854_v23 = vshrl.u32 %v797_v12, 16 }
 0x1e4   : > { %v728_v21 = vrot.slane %v721_v15, %v1283_v25  ;;  %v831_v24 = vrot.slane %v817_v14, %v1289_v31  ;;  %v846_v28 = vshrl.u32 %v798_v16, 16 }
 0x1e5   : > { %v711_v27 = vrot.slane %v704_v17, %v1289_v31  ;;  %v832_v29 = vcombine.high %v824_v20, %v1211_v42  ;;  %v836_v30 = vpack.i.b16 %v824_v20, %v790_v10  ;;  %v839_v35 = vshrl.u32 %v824_v20, 16 }
 0x1e6   : > { %v729_v32 = vcombine.low %v720_v18, %v728_v21  ;;  %v833_v34 = vcombine.high %v831_v24, %v1211_v42  ;;  %v852_v36 = vpack.i.b16 %v831_v24, %v797_v12  ;;  %v862_v38 = vshrl.u32 %v799_v19, 16 }
 0x1e7   : > { %v712_v37 = vcombine.high %v711_v27, %v1211_v42  ;;  %v844_v39 = vpack.i.b16 %v832_v29, %v798_v16  ;;  %v847_v40 = vshrl.u32 %v832_v29, 16  ;;  %v840_v43 = vpack.i.b16 %v839_v35, %v838_v22 }
 0x1e8   : > { %v736_v41 = vrot.slane %v729_v32, %v1289_v31  ;;  %v855_v26 = vshrl.u32 %v831_v24, 16  ;;  %v860_v44 = vpack.i.b16 %v833_v34, %v799_v19  ;;  %v742_v45 = vshrl.u32 %v711_v27, 16 }
 0x1e9   : > { %v848_v46 = vpack.i.b16 %v847_v40, %v846_v28  ;;  %v863_v47 = vshrl.u32 %v833_v34, 16  ;;  %v866_v48 = vcombine.low %v836_v30, %v852_v36  ;;  %v750_v53 = vshrl.u32 %v712_v37, 16 }
 0x1ea   : > { %v737_v49 = vcombine.high %v736_v41, %v1211_v42  ;;  %v740_v50 = vpack.i.b16 %v736_v41, %v711_v27  ;;  %v743_v51 = vshrl.u32 %v736_v41, 16  ;;  %v856_v52 = vpack.i.b16 %v855_v26, %v854_v23 }
 0x1eb   : > { %v864_v54 = vpack.i.b16 %v863_v47, %v862_v38  ;;  %v874_v55 = vcombine.low %v844_v39, %v860_v44  ;;  %v873_v59 = vrot.slane %v866_v48, %v1283_v25 }
 0x1ec   : > { %v744_v56 = vpack.i.b16 %v743_v51, %v742_v45  ;;  %v748_v57 = vpack.i.b16 %v737_v49, %v712_v37  ;;  %v751_v33 = vshrl.u32 %v737_v49, 16  ;;  %754 = vst.msk [vmem:[%s313_s26] sm:$0xf] %vm567_vm2, %v740_v50  ;;  %v891_v58 = vcombine.low %v840_v43, %v856_v52 }
 0x1ed   : > { %v881_v60 = vrot.slane %v874_v55, %v1283_v25  ;;  %v899_v61 = vcombine.low %v848_v46, %v864_v54 }
 0x1ee   : > { %v752_v62 = vpack.i.b16 %v751_v33, %v750_v53  ;;  %755 = vst.msk [vmem:[%s313_s26 + $0x4] sm:$0xf] %vm567_vm2, %v744_v56  ;;  %756 = vst.msk [vmem:[%s313_s26 + $0x8] sm:$0xf] %vm567_vm2, %v748_v57  ;;  %v898_v0 = vrot.slane %v891_v58, %v1283_v25 }
 0x1ef   : > { %v882_v63 = vcombine.low %v873_v59, %v881_v60  ;;  %v906_v1 = vrot.slane %v899_v61, %v1283_v25 }
 0x1f0   : > { %757 = vst.msk [vmem:[%s313_s26 + $0xc] sm:$0xf] %vm567_vm2, %v752_v62 }
 0x1f1   : > { %v889_v2 = vrot.slane %v882_v63, %v1289_v31  ;;  %v907_v3 = vcombine.low %v898_v0, %v906_v1 }
 0x1f3   : > { %v890_v4 = vcombine.high %v889_v2, %v1211_v42  ;;  %v914_v5 = vrot.slane %v907_v3, %v1289_v31  ;;  %v920_v8 = vshrl.u32 %v889_v2, 16 }
 0x1f5   : > { %v915_v6 = vcombine.high %v914_v5, %v1211_v42  ;;  %v918_v7 = vpack.i.b16 %v914_v5, %v889_v2  ;;  %v921_v9 = vshrl.u32 %v914_v5, 16  ;;  %v928_v11 = vshrl.u32 %v890_v4, 16 }
 0x1f7   : > { %v922_v10 = vpack.i.b16 %v921_v9, %v920_v8  ;;  %v926_v25 = vpack.i.b16 %v915_v6, %v890_v4  ;;  %v929_v12 = vshrl.u32 %v915_v6, 16  ;;  %932 = vst.msk [vmem:[%s321_s29] sm:$0xf] %vm567_vm2, %v918_v7 }
 0x1f9   : > { %v930_v13 = vpack.i.b16 %v929_v12, %v928_v11  ;;  %933 = vst.msk [vmem:[%s321_s29 + $0x4] sm:$0xf] %vm567_vm2, %v922_v10  ;;  %934 = vst.msk [vmem:[%s321_s29 + $0x8] sm:$0xf] %vm567_vm2, %v926_v25 }
 0x1fb   : > { %935 = vst.msk [vmem:[%s321_s29 + $0xc] sm:$0xf] %vm567_vm2, %v930_v13 }
 0x1fc PF: > { %s18_s25 = sadd.s32 1, %s1200_s25   ;;  %s1396_s23 = smov %s1196_s24 }
 0x1fd   : > { %p15_p5 = scmp.ge.s32.totalorder %s18_s25, 4   ;;  %s1397_s24 = smov %s1399_s0 }
 0x1ff   :  { %17 = sbr.rel (!%p15_p5) target bundleno = 2 (0x2), region = 90 }

// kernel: thresholded_attention.3
= control target key start
LH: loop header
LB: loop body
LE: loop exit
PB: predicated region body
PF: predicated region fallthrough
CT: control target
= control target key end

     0   :  { %11 = vsyncpa [#allocation6], 0  ;;  %s1942_s0 = inlined_call_operand.vmem [shape: f32[4,1,1], index: 0, kind: input, shape index: {}]   ;;  %s1943_s1 = inlined_call_operand.vmem [shape: bf16[2,4,8,8], index: 1, kind: input, shape index: {}]   ;;  %s1944_s2 = inlined_call_operand.vmem [shape: bf16[2,4,8,8], index: 2, kind: input, shape index: {}]   ;;  %s1945_s3 = inlined_call_operand.vmem [shape: bf16[2,4,8,8], index: 3, kind: input, shape index: {}]   ;;  %s1946_s4 = inlined_call_operand.vmem [shape: bf16[4,8,32], index: 4, kind: input, shape index: {}]   ;;  %s1947_s5 = inlined_call_operand.vmem [shape: f32[1,32], index: 5, kind: input, shape index: {}]   ;;  %s1948_s6 = inlined_call_operand.hbm [shape: f32[2,8,32], index: 6, kind: output, shape index: {}]  }
   0x1   :  { %13 = vsyncpa [#allocation6 + $0x1], 0  ;;  %s1667_s21 = smov 0   ;;  %s1669_s22 = smov 0  }
   0x2   :  { %s1671_s23 = smov 0   ;;  %s1673_s24 = smov 0  }
   0x3   :  { %s1675_s25 = smov 0   ;;  %s1677_s26 = smov 0  }
   0x4 LB: > { %s1327_s27 = sadd.s32 4294967295, %s1625_s26   ;;  %s1328_s28 = sadd.s32 4294967294, %s1625_s26   ;;  %s1625_s26 = sphi %s1677_s26, %s19_s26   ;;  %s1621_s25 = sphi %s1675_s25, %s1955_s25   ;;  %s1617_s24 = sphi %s1673_s24, %s1954_s24   ;;  %s1613_s23 = sphi %s1671_s23, %s1953_s23   ;;  %s1609_s22 = sphi %s1669_s22, %s1952_s22   ;;  %s1605_s21 = sphi %s1667_s21, %s1951_s21  }
   0x5   : > { %s38_s29 = sadd.s32 1, %s1621_s25  ;;  %s194_s30 = sadd.s32 1, %s1613_s23 }
   0x6   : > { %p40_p0 = scmp.ge.s32.totalorder %s38_s29, 2  ;;  %p204_p1 = scmp.ne.s32.totalorder %s1613_s23, %s1609_s22 }
   0x7   : > { %p205_p2 = scmp.eq.s32.totalorder %s1327_s27, 1  ;;  %p210_p3 = scmp.ne.s32.totalorder %s1609_s22, %s1605_s21 }
   0x8   : > { %s1957_s29 = smov (%p40_p0, %s38_s29), 0  ;;  %p211_p5 = scmp.eq.s32.totalorder %s1328_s28, 1 }
   0x9   : > { %p1707_p4 = por %p205_p2, %p204_p1  ;;  %s189_s8 = ssub.s32 %s1621_s25, %s1957_s29 }
   0xa   : > { %p1331_p6 = scmp.ge.s32.totalorder %s1625_s26, 1  ;;  %p192_p7 = scmp.eq.s32.totalorder %s189_s8, 0 }
   0xb   : > { %p1714_p8 = por %p211_p5, %p210_p3  ;;  %p271_p9 = scmp.lt.s32.totalorder %s1625_s26, 3 }
   0xc   : > { %s1720_s10 = scalar_select %p192_p7, %s1613_s23, %s194_s30  }
   0xd   : > { %p272_p10 = pnand %p1331_p6, %p271_p9 }
   0xe   : > { %p320_p11 = scmp.lt.s32.totalorder (!%p272_p10), %s1617_s24, 1  ;;  %vm358_vm0 = vcmask (!%p272_p10), 64512   ;;  %v1627_v0 = vmov (!%p272_p10), 0.0   ;;  %v1343_v1 = vld [vmem:[%s1942_s0] ss:$0 sm:$0xff] (!%p272_p10)  ;;  %vm1628_vm1 = vmmov (!%p272_p10), 0   ;;  %v615_v19 = vlaneseq (!%p272_p10) }
   0xf   : > { %275 = sbr.rel (%p272_p10) target bundleno = 1077 (0x435), region = 44  ;;  %1390 = vmatprep.subr.bf16.mxu0 (!%p272_p10), %v1627_v0  ;;  %1396 = vmatprep.subr.bf16.mxu1 (!%p272_p10), %v1627_v0  ;;  %359 = vst.msk [vmem:[#allocation4] sm:$0xff] (!%p272_p10), %vm358_vm0, %v1627_v0  ;;  %360 = vst.msk [vmem:[#allocation4 + $0x8] sm:$0xff] (!%p272_p10), %vm358_vm0, %v1627_v0  ;;  %v1345_v2 = vld [vmem:[%s1942_s0 + $0x2] ss:$0 sm:$0xff] (!%p272_p10)  ;;  %v1629_v3 = vmov (!%p272_p10), 0  }
  0x10   : > { %361 = vst.msk [vmem:[#allocation4 + $0x10] sm:$0xff] (!%p272_p10), %vm358_vm0, %v1627_v0  ;;  %362 = vst.msk [vmem:[#allocation4 + $0x18] sm:$0xff] (!%p272_p10), %vm358_vm0, %v1627_v0  ;;  %1392 = vmatprep.mubr.msk.bf16.mxu0 (!%p272_p10), %vm1628_vm1, %v1627_v0  ;;  %1398 = vmatprep.mubr.msk.bf16.mxu1 (!%p272_p10), %vm1628_vm1, %v1627_v0  ;;  %v1344_v8 = vld [vmem:[%s1942_s0 + $0x1] ss:$0 sm:$0xff] (!%p272_p10)  ;;  %v1346_v9 = vld [vmem:[%s1942_s0 + $0x3] ss:$0 sm:$0xff] (!%p272_p10) }
  0x11   : > { %1521 = vset.pattern.permute.xlu0 (!%p272_p10), %v1629_v3  ;;  %1522 = vset.pattern.permute.xlu1 (!%p272_p10), %v1629_v3  ;;  %vm349_vm2 = vcmask (!%p272_p10), 7168   ;;  %v1630_v18 = vmov (!%p272_p10), -inf   ;;  %v616_v21 = vshrl.u32 (!%p272_p10), %v615_v19, 7  ;;  %v620_v22 = vand.u32 (!%p272_p10), 127, %v615_v19  ;;  %s317_s8 = sand.u32 (!%p272_p10), 1, %s1609_s22   ;;  %s1360_s14 = sshll.u32 (!%p272_p10), %s1617_s24, 7 }
  0x12   : > { %592 = vperm.xlu0 (!%p272_p10), %1521, %v1343_v1   ;;  %600 = vperm.xlu1 (!%p272_p10), %1522, %v1345_v2   ;;  %351 = vst.msk [vmem:[#allocation2 + $0x8] sm:$0xff] (!%p272_p10), %vm349_vm2, %v1630_v18  ;;  %350 = vst.msk [vmem:[#allocation2] sm:$0xff] (!%p272_p10), %vm349_vm2, %v1630_v18  ;;  %vm757_vm8 = vcmask (!%p272_p10), 1043456   ;;  %s1332_s11 = sshll.u32 (!%p272_p10), %s317_s8, 3  ;;  %vm1197_vm9 = vcmask (!%p272_p10), 261120   ;;  %s1631_s27 = smov (!%p272_p10), [#allocation5]  }
  0x13   : > { %352 = vst.msk [vmem:[#allocation2 + $0x10] sm:$0xff] (!%p272_p10), %vm349_vm2, %v1630_v18  ;;  %353 = vst.msk [vmem:[#allocation2 + $0x18] sm:$0xff] (!%p272_p10), %vm349_vm2, %v1630_v18  ;;  %vm623_vm3 = vcmp.gt.s32.totalorder (!%p272_p10), %v620_v22, %v616_v21  ;;  %s1551_s28 = sshll.u32 (!%p272_p10), %s1631_s27, 4  ;;  %s1552_s28 = int_to_ptr.vmem [resolvable:$false] %s1551_s28 }
  0x14   : > { %354 = vst.msk [vmem:[#allocation3] sm:$0xff] (!%p272_p10), %vm349_vm2, %v1627_v0  ;;  %355 = vst.msk [vmem:[#allocation3 + $0x8] sm:$0xff] (!%p272_p10), %vm349_vm2, %v1627_v0  ;;  %v624_v27 = vsel (!%p272_p10), %vm623_vm3, -1e+30, %v1627_v0  ;;  %s1553_s30 = scalar_lea.vmem (!%p272_p10), %s1552_s28, 256 }
  0x15   : > { %356 = vst.msk [vmem:[#allocation3 + $0x10] sm:$0xff] (!%p272_p10), %vm349_vm2, %v1627_v0  ;;  %357 = vst.msk [vmem:[#allocation3 + $0x18] sm:$0xff] (!%p272_p10), %vm349_vm2, %v1627_v0 }
  0x16   : > { %s321_s15 = scalar_select %p320_p11, %s1617_s24, 1  ;;  %596 = vperm.xlu0 %1521, %v1344_v8   ;;  %604 = vperm.xlu1 %1522, %v1346_v9  }
  0x17   : > { %s1200_s24 = scalar_lea.sflag [#allocation6], %s317_s8 }
  0x18   : > { %s1744_s16 = sshll.u32 %s321_s15, 4 }
  0x19   : > { %s335_s19 = scalar_lea.vmem %s1944_s2, %s1744_s16  ;;  %s327_s12 = scalar_lea.vmem %s1943_s1, %s1744_s16  ;;  %v1800_v55 = vld [vmem:[#allocation2 + $0x8] sm:$0xff]  ;;  %v1802_v56 = vld [vmem:[#allocation2] sm:$0xff] }
  0x1a   : > { %v374_v4 = vld [vmem:[%s335_s19] sm:$0xf]  ;;  %v375_v5 = vld [vmem:[%s335_s19 + $0x4] sm:$0xf]  ;;  %v376_v10 = vld [vmem:[%s335_s19 + $0x8] sm:$0xf]  ;;  %s343_s15 = scalar_lea.vmem %s1945_s3, %s1744_s16 }
  0x1b   : > { %v387_v6 = vsel %vm358_vm0, %v374_v4, 0  ;;  %v433_v7 = vsel %vm358_vm0, %v375_v5, 0  ;;  %v377_v11 = vld [vmem:[%s335_s19 + $0xc] sm:$0xf]  ;;  %v370_v12 = vld [vmem:[%s327_s12] sm:$0xf]  ;;  %s1895_s19 = scalar_lea.hbm %s1948_s6, %s1360_s14 }
  0x1c   : > { %1391 = vmatpush3.bf16.xpose.msra.mxu0 %v387_v6  ;;  %1397 = vmatpush3.bf16.xpose.msra.mxu1 %v433_v7  ;;  %v371_v13 = vld [vmem:[%s327_s12 + $0x4] sm:$0xf]  ;;  %v479_v14 = vsel %vm358_vm0, %v376_v10, 0  ;;  %v525_v15 = vsel %vm358_vm0, %v377_v11, 0  ;;  %v372_v16 = vld [vmem:[%s327_s12 + $0x8] sm:$0xf] }
  0x1d   : > { %1402 = vmatprep.subr.bf16.mxu0 %v1627_v0  ;;  %1408 = vmatprep.subr.bf16.mxu1 %v1627_v0  ;;  %v373_v17 = vld [vmem:[%s327_s12 + $0xc] sm:$0xf]  ;;  %v631_v63 = vld [vmem:[#allocation2 + $0x10] sm:$0xff]  ;;  %v1815_v3 = vld [vmem:[#allocation2 + $0x18] sm:$0xff] }
  0x1e   : > { %v378_v8 = vld [vmem:[%s343_s15] sm:$0xf]  ;;  %v379_v9 = vld [vmem:[%s343_s15 + $0x4] sm:$0xf] }
  0x1f   : > { %v759_v10 = vsel %vm757_vm8, %v378_v8, 0  ;;  %v805_v11 = vsel %vm757_vm8, %v379_v9, 0  ;;  %v994_v9 = vld [vmem:[%s1946_s4] sm:$0xf] }
  0x23   : > { %1393 = vmatmul.mubr.msk.bf16.vlgmr.msra.gmra.mrb[0].mxu0 %vm358_vm0, %v370_v12  ;;  %1399 = vmatmul.mubr.msk.bf16.vlgmr.msra.gmra.mrb[0].mxu1 %vm358_vm0, %v371_v13 }
  0x24   : > { %1403 = vmatpush3.bf16.xpose.msra.mxu0 %v479_v14  ;;  %1409 = vmatpush3.bf16.xpose.msra.mxu1 %v525_v15 }
  0x25   : > { %1404 = vmatprep.mubr.msk.bf16.mxu0 %vm1628_vm1, %v1627_v0  ;;  %1410 = vmatprep.mubr.msk.bf16.mxu1 %vm1628_vm1, %v1627_v0 }
  0x26   : > { %1414 = vmatprep.subr.bf16.mxu0 %v1627_v0  ;;  %1420 = vmatprep.subr.bf16.mxu1 %v1627_v0 }
  0x2b   : > { %1405 = vmatmul.mubr.msk.bf16.vlgmr.msra.gmra.mrb[4].mxu0 %vm358_vm0, %v372_v16  ;;  %1411 = vmatmul.mubr.msk.bf16.vlgmr.msra.gmra.mrb[4].mxu1 %vm358_vm0, %v373_v17 }
  0x2c   : > { %1416 = vmatprep.mubr.msk.bf16.mxu0 %vm1628_vm1, %v1627_v0  ;;  %1422 = vmatprep.mubr.msk.bf16.mxu1 %vm1628_vm1, %v1627_v0 }
  0x2d   : > { %1415 = vmatpush3.bf16.msra.mxu0 %v759_v10  ;;  %1421 = vmatpush3.bf16.msra.mxu1 %v805_v11  ;;  %v1049_v10 = vsel %vm757_vm8, %v994_v9, 0 }
  0x2e   : > { %1426 = vmatprep.subr.bf16.mxu0 %v1627_v0  ;;  %1432 = vmatprep.subr.bf16.mxu1 %v1627_v0 }
  0x91   : > { %v593_v20 = vpop.permute.xlu0 %592  ;;  %v601_v24 = vpop.permute.xlu1 %600 }
  0x95   : > { %v597_v23 = vpop.permute.xlu0 %596  ;;  %v605_v40 = vpop.permute.xlu1 %604 }
  0xf6   : > { %v423_v25 = vpop.f32.mrb[0].mxu0  ;;  %v469_v26 = vpop.f32.mrb[0].mxu1 }
  0xf7   : > { %vm607_vm4 = vcmp.lt.f32.partialorder %v423_v25, %v593_v20  ;;  %vm608_vm5 = vcmp.lt.f32.partialorder %v469_v26, %v597_v23  ;;  %v1394_v28 = vpop.f32.mrb[1].mxu0  ;;  %v1400_v29 = vpop.f32.mrb[1].mxu1  ;;  %v380_v23 = vld [vmem:[%s343_s15 + $0x8] sm:$0xf] }
  0xf8   : > { %v611_v30 = vsel %vm607_vm4, -10000.0, %v423_v25  ;;  %v612_v31 = vsel %vm608_vm5, -10000.0, %v469_v26  ;;  %v426_v32 = vpop.f32.mrb[2].mxu0  ;;  %v472_v33 = vpop.f32.mrb[2].mxu1 }
  0xf9   : > { %v1395_v34 = vpop.f32.mrb[3].mxu0  ;;  %v1401_v35 = vpop.f32.mrb[3].mxu1  ;;  %v1793_v36 = vadd.f32 %v624_v27, %v612_v31  ;;  %v625_v37 = vadd.f32 %v624_v27, %v611_v30  ;;  %v851_v30 = vsel %vm757_vm8, %v380_v23, 0 }
  0xfb   : > { %v636_v38 = vsel %vm358_vm0, %v1793_v36, -inf  ;;  %v633_v39 = vsel %vm358_vm0, %v625_v37, -inf }
  0xfc   : > { %637 = vmax.xlane.f32.xlu1 %v636_v38  ;;  %634 = vmax.xlane.f32.xlu0 %v633_v39 }
  0xfe   : > { %v515_v41 = vpop.f32.mrb[4].mxu0  ;;  %v561_v42 = vpop.f32.mrb[4].mxu1 }
  0xff   : > { %vm609_vm6 = vcmp.lt.f32.partialorder %v515_v41, %v601_v24  ;;  %v1406_v43 = vpop.f32.mrb[5].mxu0  ;;  %vm610_vm7 = vcmp.lt.f32.partialorder %v561_v42, %v605_v40  ;;  %v1412_v44 = vpop.f32.mrb[5].mxu1  ;;  %v381_v24 = vld [vmem:[%s343_s15 + $0xc] sm:$0xf]  ;;  %s319_s15 = scalar_lea.vmem [#allocation5], %s1332_s11 }
 0x100   : > { %v613_v45 = vsel %vm609_vm6, -10000.0, %v515_v41  ;;  %v614_v46 = vsel %vm610_vm7, -10000.0, %v561_v42  ;;  %v518_v47 = vpop.f32.mrb[6].mxu0  ;;  %v564_v48 = vpop.f32.mrb[6].mxu1  ;;  %v897_v33 = vsel %vm757_vm8, %v381_v24, 0  ;;  %s1214_s16 = sshll.u32 %s319_s15, 4  ;;  %s1897_s16 = int_to_ptr.vmem [resolvable:$true] %s1214_s16 }
 0x101   : > { %v1407_v49 = vpop.f32.mrb[7].mxu0  ;;  %v1413_v50 = vpop.f32.mrb[7].mxu1  ;;  %v627_v51 = vadd.f32 %v624_v27, %v613_v45  ;;  %v628_v53 = vadd.f32 %v624_v27, %v614_v46  ;;  %v1351_v48 = vld [vmem:[%s1946_s4 + $0x4] sm:$0xf]  ;;  %s1547_s20 = scalar_lea.vmem %s1897_s16, 128  ;;  %p1554_p1 = scmp.lt.s32.totalorder %s1897_s16, %s1552_s28 }
 0x102   : > { %v1003_v49 = vsel %vm757_vm8, %v1351_v48, 0  ;;  %v693_v50 = vld [vmem:[#allocation3] sm:$0xff]  ;;  %p1548_p12 = scmp.ne.s32.totalorder %s1897_s16, %s1547_s20  ;;  %p1555_p2 = scmp.lt.s32.totalorder %s1553_s30, %s1547_s20 }
 0x103   : > { %v639_v52 = vsel %vm358_vm0, %v627_v51, -inf  ;;  %v642_v54 = vsel %vm358_vm0, %v628_v53, -inf }
 0x104   : > { %640 = vmax.xlane.f32.xlu0 %v639_v52  ;;  %p1549_p13 = pnand %p1548_p12, %p1707_p4  ;;  %p1556_p3 = por %p1555_p2, %p1554_p1 }
 0x106   : > { %p1550_p0 = pneg %p1549_p13 }
 0x108   : > { %643 = vmax.xlane.f32.xlu0 %v642_v54  ;;  %p1557_p5 = pnand %p1556_p3, %p1550_p0 }
 0x189   : > { %v638_v57 = vpop.xlane.xlu1 %637  ;;  %v635_v58 = vpop.xlane.xlu0 %634 }
 0x18a   : > { %v646_v59 = vmax.f32 %v1800_v55, %v638_v57  ;;  %v1806_v60 = vmax.f32 %v1802_v56, %v635_v58  ;;  %v695_v58 = vld [vmem:[#allocation3 + $0x10] sm:$0xff] }
 0x18c   : > { %v650_v61 = vsub.f32 %v1800_v55, %v646_v59  ;;  %948 = vst.msk [vmem:[#allocation2 + $0x8] sm:$0xff] %vm349_vm2, %v646_v59  ;;  %v649_v62 = vsub.f32 %v1802_v56, %v1806_v60  ;;  %947 = vst.msk [vmem:[#allocation2] sm:$0xff] %vm349_vm2, %v1806_v60  ;;  %663 = vperm.xlu1 %1522, %v1806_v60   ;;  %668 = vperm.xlu0 %1521, %v646_v59  }
 0x18e   : > { %v655_v34 = vmul.f32 1.442695, %v650_v61  ;;  %v653_v44 = vmul.f32 1.442695, %v649_v62  ;;  %v696_v61 = vld [vmem:[#allocation3 + $0x18] sm:$0xff] }
 0x191   : > { %v641_v1 = vpop.xlane.xlu0 %640 }
 0x192   : > { %v647_v2 = vmax.f32 %v631_v63, %v641_v1 }
 0x194   : > { %v651_v4 = vsub.f32 %v631_v63, %v647_v2  ;;  %949 = vst.msk [vmem:[#allocation2 + $0x10] sm:$0xff] %vm349_vm2, %v647_v2  ;;  %673 = vperm.xlu1 %1522, %v647_v2  }
 0x195   : > { %v644_v5 = vpop.xlane.xlu0 %643 }
 0x196   : > { %v648_v6 = vmax.f32 %v1815_v3, %v644_v5 }
 0x198   : > { %v652_v7 = vsub.f32 %v1815_v3, %v648_v6  ;;  %950 = vst.msk [vmem:[#allocation2 + $0x18] sm:$0xff] %vm349_vm2, %v648_v6  ;;  %678 = vperm.xlu1 %1522, %v648_v6  }
 0x19a   : > { %v659_v40 = vmul.f32 1.442695, %v652_v7 }
 0x20b   : > { %v664_v12 = vpop.permute.xlu1 %663  ;;  %v669_v13 = vpop.permute.xlu0 %668 }
 0x20c   : > { %v681_v14 = vsub.f32 %v625_v37, %v664_v12  ;;  %v682_v15 = vsub.f32 %v1793_v36, %v669_v13  ;;  %v657_v36 = vmul.f32 1.442695, %v651_v4 }
 0x20e   : > { %v685_v16 = vmul.f32 1.442695, %v681_v14  ;;  %v687_v17 = vmul.f32 1.442695, %v682_v15  ;;  %v722_v14 = vld [vmem:[#allocation4] sm:$0xff] }
 0x210   : > { %1523 = vpow2.f32 %v685_v16  ;;  %v723_v16 = vld [vmem:[#allocation4 + $0x8] sm:$0xff] }
 0x211   : > { %1525 = vpow2.f32 %v687_v17 }
 0x213   : > { %v674_v18 = vpop.permute.xlu1 %673 }
 0x214   : > { %v683_v19 = vsub.f32 %v627_v51, %v674_v18  ;;  %v694_v51 = vld [vmem:[#allocation3 + $0x8] sm:$0xff] }
 0x216   : > { %v689_v20 = vmul.f32 1.442695, %v683_v19 }
 0x217   : > { %v679_v21 = vpop.permute.xlu1 %678 }
 0x218   : > { %1527 = vpow2.f32 %v689_v20  ;;  %v684_v22 = vsub.f32 %v628_v53, %v679_v21 }
 0x21a   : > { %v1524_v25 = vpop.eup %1523  ;;  %v691_v26 = vmul.f32 1.442695, %v684_v22 }
 0x21b   : > { %v1526_v27 = vpop.eup %1525  ;;  %v701_v28 = vsel %vm358_vm0, %v1524_v25, 0.0  ;;  %v750_v29 = vpack.c.bf16 %v1524_v25, %v1524_v25 }
 0x21c   : > { %1529 = vpow2.f32 %v691_v26  ;;  %702 = vadd.xlane.f32.xlu1 %v701_v28  ;;  %v704_v31 = vsel %vm358_vm0, %v1526_v27, 0.0  ;;  %v751_v32 = vpack.c.bf16 %v1526_v27, %v1526_v27 }
 0x21d   : > { %705 = vadd.xlane.f32.xlu0 %v704_v31  ;;  %1417 = vmatmul.mubr.msk.bf16.vlgmr.msra.gmra.mrb[8].mxu0 %vm358_vm0, %v750_v29  ;;  %1531 = vpow2.f32 %v655_v34  ;;  %v724_v29 = vld [vmem:[#allocation4 + $0x10] sm:$0xff] }
 0x21e   : > { %1423 = vmatmul.mubr.msk.bf16.vlgmr.msra.gmra.mrb[8].mxu1 %vm358_vm0, %v751_v32  ;;  %1427 = vmatpush3.bf16.msra.mxu0 %v851_v30  ;;  %1533 = vpow2.f32 %v657_v36  ;;  %v725_v32 = vld [vmem:[#allocation4 + $0x18] sm:$0xff] }
 0x21f   : > { %1428 = vmatprep.mubr.msk.bf16.mxu0 %vm1628_vm1, %v1627_v0  ;;  %1433 = vmatpush3.bf16.msra.mxu1 %v897_v33  ;;  %1535 = vpow2.f32 %v659_v40 }
 0x220   : > { %1434 = vmatprep.mubr.msk.bf16.mxu1 %vm1628_vm1, %v1627_v0  ;;  %1438 = vmatprep.subr.bf16.mxu0 %v1627_v0  ;;  %1537 = vpow2.f32 %v653_v44 }
 0x221   : > { %1444 = vmatprep.subr.bf16.mxu1 %v1627_v0 }
 0x222   : > { %v1528_v35 = vpop.eup %1527 }
 0x223   : > { %v707_v37 = vsel %vm358_vm0, %v1528_v35, 0.0  ;;  %v752_v38 = vpack.c.bf16 %v1528_v35, %v1528_v35 }
 0x224   : > { %708 = vadd.xlane.f32.xlu0 %v707_v37 }
 0x225   : > { %1429 = vmatmul.mubr.msk.bf16.vlgmr.msra.gmra.mrb[12].mxu0 %vm358_vm0, %v752_v38 }
 0x226   : > { %v1530_v39 = vpop.eup %1529  ;;  %1440 = vmatprep.mubr.msk.bf16.mxu0 %vm1628_vm1, %v1627_v0  ;;  %1439 = vmatpush3.bf16.msra.mxu0 %v1003_v49 }
 0x227   : > { %v710_v41 = vsel %vm358_vm0, %v1530_v39, 0.0  ;;  %v753_v42 = vpack.c.bf16 %v1530_v39, %v1530_v39  ;;  %v1532_v43 = vpop.eup %1531  ;;  %1450 = vmatprep.subr.bf16.mxu0 %v1627_v0 }
 0x228   : > { %711 = vadd.xlane.f32.xlu0 %v710_v41  ;;  %v1534_v45 = vpop.eup %1533  ;;  %v698_v54 = vmul.f32 %v1532_v43, %v694_v51  ;;  %v1354_v51 = vld [vmem:[%s1946_s4 + $0x8] sm:$0xf] }
 0x229   : > { %1435 = vmatmul.mubr.msk.bf16.vlgmr.msra.gmra.mrb[12].mxu1 %vm358_vm0, %v753_v42  ;;  %v1536_v46 = vpop.eup %1535  ;;  %v699_v59 = vmul.f32 %v1534_v45, %v695_v58 }
 0x22a   : > { %1446 = vmatprep.mubr.msk.bf16.mxu1 %vm1628_vm1, %v1627_v0  ;;  %v1538_v47 = vpop.eup %1537  ;;  %v700_v1 = vmul.f32 %v1536_v46, %v696_v61  ;;  %1445 = vmatpush3.bf16.msra.mxu1 %v1049_v10 }
 0x22b   : > { %v697_v52 = vmul.f32 %v1538_v47, %v693_v50  ;;  %1456 = vmatprep.subr.bf16.mxu1 %v1627_v0 }
 0x22d   : > { %733 = vperm.xlu1 %1522, %v1532_v43  }
 0x231   : > { %738 = vperm.xlu1 %1522, %v1534_v45  }
 0x235   : > { %743 = vperm.xlu1 %1522, %v1536_v46  }
 0x23e   : > { %728 = vperm.xlu0 %1521, %v1538_v47   ;;  %v1356_v47 = vld [vmem:[%s1946_s4 + $0xc] sm:$0xf] }
 0x2a9   : > { %v703_v53 = vpop.xlane.xlu1 %702 }
 0x2aa   : > { %v713_v55 = vadd.f32 %v703_v53, %v697_v52  ;;  %v706_v56 = vpop.xlane.xlu0 %705 }
 0x2ab   : > { %v714_v57 = vadd.f32 %v706_v56, %v698_v54  ;;  %v1146_v54 = vsel %vm757_vm8, %v1356_v47, 0  ;;  %v1097_v56 = vsel %vm757_vm8, %v1354_v51, 0 }
 0x2ac   : > { %718 = vst.msk [vmem:[#allocation3] sm:$0xff] %vm349_vm2, %v713_v55 }
 0x2ad   : > { %719 = vst.msk [vmem:[#allocation3 + $0x8] sm:$0xff] %vm349_vm2, %v714_v57  ;;  %v734_v13 = vpop.permute.xlu1 %733 }
 0x2ae   : > { %v747_v18 = vmul.f32 %v734_v13, %v723_v16  ;;  %v1358_v16 = vld [vmem:[%s1947_s5] ss:$0 sm:$0xff] }
 0x2b1   : > { %v709_v60 = vpop.xlane.xlu0 %708  ;;  %v739_v19 = vpop.permute.xlu1 %738 }
 0x2b2   : > { %v715_v62 = vadd.f32 %v709_v60, %v699_v59  ;;  %v748_v31 = vmul.f32 %v739_v19, %v724_v29 }
 0x2b3   : > { %v958_v63 = vld [vmem:[#allocation3] sm:$0xff] }
 0x2b4   : > { %720 = vst.msk [vmem:[#allocation3 + $0x10] sm:$0xff] %vm349_vm2, %v715_v62  ;;  %1539 = vrcp.f32 %v958_v63  ;;  %v959_v2 = vld [vmem:[#allocation3 + $0x8] sm:$0xff] }
 0x2b5   : > { %v712_v3 = vpop.xlane.xlu0 %711  ;;  %1541 = vrcp.f32 %v959_v2  ;;  %v744_v33 = vpop.permute.xlu1 %743 }
 0x2b6   : > { %v716_v4 = vadd.f32 %v712_v3, %v700_v1  ;;  %v749_v38 = vmul.f32 %v744_v33, %v725_v32 }
 0x2b8   : > { %721 = vst.msk [vmem:[#allocation3 + $0x18] sm:$0xff] %vm349_vm2, %v716_v4 }
 0x2bb   : > { %v960_v5 = vld [vmem:[#allocation3 + $0x10] sm:$0xff] }
 0x2bc   : > { %1543 = vrcp.f32 %v960_v5 }
 0x2bd   : > { %v729_v15 = vpop.permute.xlu0 %728 }
 0x2be   : > { %v1540_v6 = vpop.eup %1539  ;;  %v746_v17 = vmul.f32 %v729_v15, %v722_v14 }
 0x2bf   : > { %v1542_v7 = vpop.eup %1541  ;;  %968 = vperm.xlu1 %1522, %v1540_v6   ;;  %v961_v8 = vld [vmem:[#allocation3 + $0x18] sm:$0xff] }
 0x2c0   : > { %973 = vperm.xlu0 %1521, %v1542_v7   ;;  %1545 = vrcp.f32 %v961_v8 }
 0x2c6   : > { %v1544_v11 = vpop.eup %1543 }
 0x2c7   : > { %978 = vperm.xlu0 %1521, %v1544_v11  }
 0x2ca   : > { %v1546_v12 = vpop.eup %1545 }
 0x2cb   : > { %983 = vperm.xlu1 %1522, %v1546_v12  }
 0x2f0   : > { %v795_v20 = vpop.f32.mrb[8].mxu0 }
 0x2f1   : > { %v939_v21 = vadd.f32 %v795_v20, %v746_v17  ;;  %v841_v22 = vpop.f32.mrb[8].mxu1  ;;  %v1418_v23 = vpop.f32.mrb[9].mxu0 }
 0x2f2   : > { %v940_v24 = vadd.f32 %v841_v22, %v747_v18  ;;  %v1424_v25 = vpop.f32.mrb[9].mxu1  ;;  %v798_v26 = vpop.f32.mrb[10].mxu0 }
 0x2f3   : > { %943 = vst.msk [vmem:[#allocation4] sm:$0xff] %vm358_vm0, %v939_v21  ;;  %v844_v27 = vpop.f32.mrb[10].mxu1  ;;  %v1419_v28 = vpop.f32.mrb[11].mxu0 }
 0x2f4   : > { %944 = vst.msk [vmem:[#allocation4 + $0x8] sm:$0xff] %vm358_vm0, %v940_v24  ;;  %v1425_v30 = vpop.f32.mrb[11].mxu1 }
 0x2f8   : > { %v887_v34 = vpop.f32.mrb[12].mxu0 }
 0x2f9   : > { %v941_v35 = vadd.f32 %v887_v34, %v748_v31  ;;  %v1430_v36 = vpop.f32.mrb[13].mxu0 }
 0x2fa   : > { %v890_v37 = vpop.f32.mrb[14].mxu0  ;;  %v954_v46 = vld [vmem:[#allocation4] sm:$0xff] }
 0x2fb   : > { %945 = vst.msk [vmem:[#allocation4 + $0x10] sm:$0xff] %vm358_vm0, %v941_v35  ;;  %v1431_v39 = vpop.f32.mrb[15].mxu0  ;;  %v955_v49 = vld [vmem:[#allocation4 + $0x8] sm:$0xff] }
 0x2fc   : > { %v933_v40 = vpop.f32.mrb[12].mxu1 }
 0x2fd   : > { %v942_v41 = vadd.f32 %v933_v40, %v749_v38  ;;  %v1436_v42 = vpop.f32.mrb[13].mxu1 }
 0x2fe   : > { %v936_v43 = vpop.f32.mrb[14].mxu1 }
 0x2ff   : > { %946 = vst.msk [vmem:[#allocation4 + $0x18] sm:$0xff] %vm358_vm0, %v942_v41  ;;  %v1437_v44 = vpop.f32.mrb[15].mxu1 }
 0x302   : > { %v956_v58 = vld [vmem:[#allocation4 + $0x10] sm:$0xff] }
 0x306   : > { %v957_v61 = vld [vmem:[#allocation4 + $0x18] sm:$0xff] }
 0x33e   : > { %v969_v45 = vpop.permute.xlu1 %968 }
 0x33f   : > { %v986_v48 = vmul.f32 %v969_v45, %v954_v46  ;;  %v974_v50 = vpop.permute.xlu0 %973 }
 0x340   : > { %v987_v52 = vmul.f32 %v974_v50, %v955_v49 }
 0x341   : > { %v990_v53 = vpack.c.bf16 %v986_v48, %v986_v48 }
 0x342   : > { %v991_v55 = vpack.c.bf16 %v987_v52, %v987_v52 }
 0x343   : > { %1447 = vmatmul.mubr.msk.bf16.vlgmr.msra.gmra.mrb[16].mxu1 %vm358_vm0, %v990_v53 }
 0x344   : > { %1441 = vmatmul.mubr.msk.bf16.vlgmr.msra.gmra.mrb[16].mxu0 %vm358_vm0, %v991_v55  ;;  %1457 = vmatpush3.bf16.msra.mxu1 %v1146_v54 }
 0x345   : > { %1451 = vmatpush3.bf16.msra.mxu0 %v1097_v56  ;;  %1452 = vmatprep.mubr.msk.bf16.mxu0 %vm1628_vm1, %v1627_v0 }
 0x346   : > { %v979_v57 = vpop.permute.xlu0 %978  ;;  %1458 = vmatprep.mubr.msk.bf16.mxu1 %vm1628_vm1, %v1627_v0 }
 0x347   : > { %v988_v59 = vmul.f32 %v979_v57, %v956_v58 }
 0x349   : > { %v992_v60 = vpack.c.bf16 %v988_v59, %v988_v59 }
 0x34a   : > { %v984_v62 = vpop.permute.xlu1 %983 }
 0x34b   : > { %v989_v63 = vmul.f32 %v984_v62, %v957_v61 }
 0x34c   : > { %1453 = vmatmul.mubr.msk.bf16.vlgmr.msra.gmra.mrb[20].mxu0 %vm358_vm0, %v992_v60 }
 0x34d   : > { %v993_v1 = vpack.c.bf16 %v989_v63, %v989_v63 }
 0x34f   : > { %1459 = vmatmul.mubr.msk.bf16.vlgmr.msra.gmra.mrb[20].mxu1 %vm358_vm0, %v993_v1 }
 0x416   : > { %v1085_v2 = vpop.f32.mrb[16].mxu1 }
 0x417   : > { %v1039_v3 = vpop.f32.mrb[16].mxu0  ;;  %v1448_v4 = vpop.f32.mrb[17].mxu1 }
 0x418   : > { %v1086_v5 = vadd.f32 %v1085_v2, %v1039_v3  ;;  %v1442_v6 = vpop.f32.mrb[17].mxu0  ;;  %v1088_v7 = vpop.f32.mrb[18].mxu1 }
 0x419   : > { %v1042_v8 = vpop.f32.mrb[18].mxu0  ;;  %v1449_v0 = vpop.f32.mrb[19].mxu1 }
 0x41a   : > { %v1443_v9 = vpop.f32.mrb[19].mxu0 }
 0x41f   : > { %v1133_v10 = vpop.f32.mrb[20].mxu0 }
 0x420   : > { %v1139_v11 = vadd.f32 %v1133_v10, %v1086_v5  ;;  %v1454_v12 = vpop.f32.mrb[21].mxu0 }
 0x421   : > { %v1136_v13 = vpop.f32.mrb[22].mxu0 }
 0x422   : > { %v1455_v14 = vpop.f32.mrb[23].mxu0  ;;  %v1182_v15 = vpop.f32.mrb[20].mxu1 }
 0x423   : > { %v1188_v17 = vadd.f32 %v1182_v15, %v1139_v11  ;;  %v1460_v18 = vpop.f32.mrb[21].mxu1 }
 0x424   : > { %v1185_v19 = vpop.f32.mrb[22].mxu1 }
 0x425   : > { %v1196_v20 = vadd.f32 %v1358_v16, %v1188_v17  ;;  %v1461_v21 = vpop.f32.mrb[23].mxu1 }
 0x427   : > { %1198 = vst.msk [vmem:[%s319_s15] sm:$0xff] %vm1197_vm9, %v1196_v20 }
 0x428   : > { %1560 = shalt.err (!%p1557_p5)
}
 0x429   : > { %s1561_s8 = scalar_lea.hbm %s1895_s19, 128  ;;  %s1565_s13 = scalar_lea.hbm %s1948_s6, 256 }
 0x42a   : > { %p1562_p6 = scmp.ne.s32.totalorder %s1895_s19, %s1561_s8  ;;  %p1566_p10 = scmp.lt.u32.totalorder %s1895_s19, %s1948_s6 }
 0x42b   : > { %p1567_p11 = scmp.lt.u32.totalorder %s1565_s13, %s1561_s8  ;;  %p1569_p13 = scmp.lt.u32.totalorder %s1561_s8, %s1895_s19 }
 0x42c   : > { %p1563_p7 = pnand %p1562_p6, %p1707_p4 }
 0x42d   : > { %p1568_p12 = por %p1567_p11, %p1566_p10 }
 0x42e   : > { %p1564_p9 = pneg %p1563_p7 }
 0x42f   : > { %p1570_p0 = por %p1569_p13, %p1568_p12 }
 0x431   : > { %p1571_p1 = pnand %p1570_p0, %p1564_p9 }
 0x433   : > { %1574 = shalt.err (!%p1571_p1)
}
 0x434   : > { %1462 = dma.vmem_to_hbm [thread:$0]  (%p1707_p4), %s1897_s16, 128, %s1895_s19, %s1200_s24  }
 0x435 PF: > { %p1468_p2 = scmp.ge.s32.totalorder %s1625_s26, 2  ;;  %s1226_s17 = sand.u32 1, %s1605_s21  }
 0x436   : > { %s1227_s18 = scalar_lea.sflag [#allocation6], %s1226_s17 }
 0x437   : > { %p1465_p3 = pnand %p1468_p2, %p1714_p8 }
 0x439   : > { %1600 = dma.done.wait (!%p1465_p3), %s1227_s18, 128  }
 0x43a   : > { %1602 = vsyncadd (!%p1465_p3), %s1227_s18, 4294967168  ;;  %s19_s26 = sadd.s32 1, %s1625_s26   ;;  %s1951_s21 = smov %s1609_s22 }
 0x43b   : > { %p16_p5 = scmp.ge.s32.totalorder %s19_s26, 4   ;;  %s1952_s22 = smov %s1613_s23 }
 0x43c   : > { %s1953_s23 = smov %s1720_s10  ;;  %s1954_s24 = smov %s1621_s25 }
 0x43d   : > { %s1955_s25 = smov %s1957_s29  ;;  %18 = sbr.rel (!%p16_p5) target bundleno = 4 (0x4), region = 100 }
 0x444   :  { %1232 = vsyncpa [#allocation6], 1 }
 0x445   :  { %1234 = vsyncpa [#allocation6 + $0x1], 1 }

</bundles_post_ra>
